<compile_context>
chip_gen: v7x
topology: tpu7x:2x2x1
jax: 0.10.0
libtpu: 0.0.40
codegen_flags: <defaults>
</compile_context>

<pallas_src>
import functools

import numpy as np
import jax
import jax.numpy as jnp
from jax import lax
from jax.experimental import pallas as pl
from jax.experimental.pallas import tpu as pltpu


# ----------------------------------------------------------------- projection (host side)
def _linear_interp_matrix(out_size: int, in_size: int) -> np.ndarray:
    """1D linear-interpolation matrix W (out,in), align_corners=True: y[i]=sum_j W[i,j] x[j]."""
    W = np.zeros((out_size, in_size), dtype=np.float64)
    if out_size == 1 or in_size == 1:
        coords = np.zeros((out_size,), dtype=np.float64)
    else:
        coords = np.arange(out_size, dtype=np.float64) * (in_size - 1) / (out_size - 1)
    lo = np.clip(np.floor(coords).astype(np.int64), 0, in_size - 1)
    hi = np.minimum(lo + 1, in_size - 1)
    frac = coords - lo
    rows = np.arange(out_size)
    np.add.at(W, (rows, lo), 1.0 - frac)
    np.add.at(W, (rows, hi), frac)
    return W


@functools.lru_cache(maxsize=None)
def _build_prior_projection_np(C: int, H: int, Wdim: int, D: int) -> np.ndarray:
    """Fold trilinear (H,W,D)->(C,C,C), row-major flatten, bilinear C^3->C (all
    align_corners=True) into a single matrix K (C, H*W*D):
        pre[b, c, q] = sum_n x[b, c, n] * K[q, n]."""
    Wh = _linear_interp_matrix(C, H)
    Ww = _linear_interp_matrix(C, Wdim)
    Wz = _linear_interp_matrix(C, D)
    # The bilinear resize's "height" axis (C -> C, align_corners=True) is exactly identity.
    Wl = _linear_interp_matrix(C, C ** 3).reshape(C, C, C, C)
    K = np.einsum("qijk,ih,jw,kd->qhwd", Wl, Wh, Ww, Wz)
    return np.ascontiguousarray(K.reshape(C, H * Wdim * D)).astype(np.float32)


# ---------------------------------------------------------------------------- kernel bodies
def _mix_matrix(S, Bt, C):
    """Block-diagonal (cpm + I) mixing matrix.

    S[b*C + c, q] = sigmoid(pre[b, c, q]).  Returns M (Bt*C, Bt*C) with
    M[b*C + q, b*C + c] = S[b*C + c, q] + (q == c), zero across different b, so that
    out = M @ x_tile applies the context prior AND the residual in one matmul."""
    BtC = Bt * C
    # E[r, q] = 1 iff q == r mod C  (compares only; no vector integer div/mod needed)
    r_q = lax.broadcasted_iota(jnp.int32, (BtC, C), 0)
    q_q = lax.broadcasted_iota(jnp.int32, (BtC, C), 1)
    E = (r_q == q_q).astype(jnp.float32)
    for b in range(1, Bt):
        E = E + (r_q == q_q + b * C).astype(jnp.float32)
    # gathered[r, s] = sum_q E[r, q] * S[s, q] = S[s, r mod C]   (tiny MXU dot, no XLU transpose)
    gathered = lax.dot_general(
        E, S, dimension_numbers=(((1,), (1,)), ((), ())),
        preferred_element_type=jnp.float32)                           # (BtC, BtC)
    r = lax.broadcasted_iota(jnp.int32, (BtC, BtC), 0)
    s = lax.broadcasted_iota(jnp.int32, (BtC, BtC), 1)
    eye = (r == s).astype(jnp.float32)
    if Bt == 1:
        return gathered + eye
    # same-batch block mask via step functions (avoids vector integer division)
    rb = (r >= C).astype(jnp.int32)
    sb = (s >= C).astype(jnp.int32)
    for k in range(2, Bt):
        rb = rb + (r >= k * C).astype(jnp.int32)
        sb = sb + (s >= k * C).astype(jnp.int32)
    return jnp.where(rb == sb, gathered, jnp.zeros_like(gathered)) + eye


def _make_single_kernel(Bt, C):
    """One grid step = one batch group, full spatial extent resident in VMEM."""
    def kernel(x_ref, k_ref, out_ref, s_ref):
        xv = x_ref[...]
        xf = xv if xv.dtype == jnp.float32 else xv.astype(jnp.float32)
        # pre[b*C + c, q] = sum_n x[b*C + c, n] * K[q, n]
        pre = lax.dot_general(
            xf, k_ref[...], dimension_numbers=(((1,), (1,)), ((), ())),
            preferred_element_type=jnp.float32)                       # (Bt*C, C)
        S = jax.nn.sigmoid(pre)                                       # EUP path
        s_ref[...] = S
        M = _mix_matrix(S, Bt, C)                                     # (Bt*C, Bt*C) f32
        out_ref[...] = jnp.dot(
            M, xf, preferred_element_type=jnp.float32).astype(out_ref.dtype)
    return kernel


def _make_ntiled_kernel(Bt, C):
    """Two-phase N-tiled variant: phase 0 accumulates pre over N tiles, phase 1 streams
    the second matmul over the same tiles (x is read twice; needed when (Bt*C, N) blocks
    do not fit VMEM, e.g. large spatial shapes on v7x's 64 MiB per-TensorCore VMEM)."""
    def kernel(x_ref, k_ref, out_ref, s_ref, pre_acc, mix_ref):
        p = pl.program_id(1)          # 0: accumulate prior, 1: apply prior
        t = pl.program_id(2)
        nt = pl.num_programs(2)

        @pl.when(jnp.logical_and(p == 0, t == 0))
        def _init():
            pre_acc[...] = jnp.zeros_like(pre_acc)

        @pl.when(p == 0)
        def _accumulate():
            xv = x_ref[...]
            xf = xv if xv.dtype == jnp.float32 else xv.astype(jnp.float32)
            pre_acc[...] += lax.dot_general(
                xf, k_ref[...], dimension_numbers=(((1,), (1,)), ((), ())),
                preferred_element_type=jnp.float32)

        @pl.when(jnp.logical_and(p == 0, t == nt - 1))
        def _finalize_prior():
            S = jax.nn.sigmoid(pre_acc[...])
            s_ref[...] = S
            mix_ref[...] = _mix_matrix(S, Bt, C)

        @pl.when(p == 1)
        def _apply():
            xv = x_ref[...]
            xf = xv if xv.dtype == jnp.float32 else xv.astype(jnp.float32)
            out_ref[...] = jnp.dot(
                mix_ref[...], xf, preferred_element_type=jnp.float32).astype(out_ref.dtype)
    return kernel


# ------------------------------------------------------------------------------- pallas call
def _prior_pallas(x2d, K, *, B, C, N, Bt, Nt, vmem_limit):
    BtC = Bt * C
    G = B // Bt
    out_dtype = jnp.promote_types(x2d.dtype, jnp.float32)   # matches torch float promotion
    out_shape = (jax.ShapeDtypeStruct((B * C, N), out_dtype),
                 jax.ShapeDtypeStruct((B * C, C), jnp.float32))

    if Nt is None:
        grid = (G,)
        in_specs = [
            pl.BlockSpec((BtC, N), lambda g: (g, 0)),
            pl.BlockSpec((C, N), lambda g: (0, 0)),          # constant index -> stays resident
        ]
        out_specs = (
            pl.BlockSpec((BtC, N), lambda g: (g, 0)),
            pl.BlockSpec((BtC, C), lambda g: (g, 0)),
        )
        scratch = []
        dims = ("parallel",)
        kernel = _make_single_kernel(Bt, C)
    else:
        NT = N // Nt
        grid = (G, 2, NT)
        in_specs = [
            pl.BlockSpec((BtC, Nt), lambda g, p, t: (g, t)),
            pl.BlockSpec((C, Nt), lambda g, p, t: (0, t * (1 - p))),  # K only needed in phase 0
        ]
        out_specs = (
            # phase 0 never stores to out; keep its block index constant so no output block
            # is written back before phase 1 fills it.
            pl.BlockSpec((BtC, Nt), lambda g, p, t: (g, t * p)),
            pl.BlockSpec((BtC, C), lambda g, p, t: (g, 0)),
        )
        scratch = [pltpu.VMEM((BtC, C), jnp.float32),         # pre accumulator
                   pltpu.VMEM((BtC, BtC), jnp.float32)]       # (cpm + I) mixing matrix
        dims = ("parallel", "arbitrary", "arbitrary")
        kernel = _make_ntiled_kernel(Bt, C)

    return pl.pallas_call(
        kernel,
        out_shape=out_shape,
        grid_spec=pltpu.PrefetchScalarGridSpec(
            num_scalar_prefetch=0,
            grid=grid,
            in_specs=in_specs,
            out_specs=out_specs,
            scratch_shapes=scratch,
        ),
        compiler_params=pltpu.CompilerParams(
            dimension_semantics=dims,
            vmem_limit_bytes=vmem_limit,
        ),
    )(x2d, K)


@functools.partial(jax.jit, static_argnames=("Bt", "Nt", "vmem_limit"))
def _prior_forward(x, K, *, Bt, Nt, vmem_limit):
    B, C, H, W, D = x.shape
    N = H * W * D
    x2d = x.reshape(B * C, N)                                  # metadata-only reshape, no copy
    out2d, s2d = _prior_pallas(x2d, K, B=B, C=C, N=N, Bt=Bt, Nt=Nt, vmem_limit=vmem_limit)
    out = out2d.reshape(B, C, H, W, D)
    # s2d[b*C + c, q] = sigmoid(pre[b, c, q]);  cpm[b, q, c] = s2d[b*C + c, q]
    cpm = jnp.transpose(s2d.reshape(B, C, C), (0, 2, 1))
    return out, cpm


# -------------------------------------------------------------------------- planning helpers
def _hw_info():
    """Best-effort, generation-aware hardware query with conservative fallbacks."""
    vmem_cap = 64 << 20          # conservative default (v7x per-TensorCore VMEM)
    num_cores = 1
    mxu_rows = 256
    try:
        vmem_cap = int(pltpu.get_tpu_info().vmem_capacity_bytes)
    except Exception:
        pass
    try:
        kind = jax.devices()[0].device_kind.lower()
        if any(tag in kind for tag in ("v4", "v5p", "v7", "7x")):
            num_cores = 2        # megacore / dual-TensorCore parts
        if "v5e" in kind or "v5 lite" in kind or "v5lite" in kind:
            mxu_rows = 128       # v5e: 4x128^2 MXU
    except Exception:
        pass
    return vmem_cap, num_cores, mxu_rows


def _plan_tiles(B, C, N, in_itemsize, vmem_cap, num_cores, mxu_rows):
    """Pick (Bt, Nt): batch-group size and spatial tile (None = full N in one block)."""
    budget = int(vmem_cap) * 3 // 4
    packing = max(1, 4 // in_itemsize)
    sub_align = 8 * packing                      # sublane alignment for this dtype's packing
    row_cap = max(1, mxu_rows // C)              # keep Bt*C around one MXU pass of rows

    divisors = [d for d in range(1, B + 1) if B % d == 0]

    def ok(d):
        return (d * C) % sub_align == 0 or d == B   # full-dim blocks are always legal

    if num_cores >= 2 and B >= 2:
        # keep >= 2 "parallel" grid steps so both TensorCores get work
        cands = [d for d in divisors if d <= B // 2 and ok(d) and d <= row_cap]
    else:
        # single TensorCore: one big step minimizes per-step overhead and maximizes DMA size
        cands = [d for d in divisors if ok(d) and d <= row_cap]
    if not cands:
        cands = [d for d in divisors if ok(d)] or [B]
    Bt = max(cands)
    BtC = Bt * C

    def fits(nt):
        b = 0
        b += 2 * BtC * nt * in_itemsize          # x input blocks (double-buffered)
        b += 2 * BtC * nt * 4                    # output blocks (f32, double-buffered)
        b += 2 * C * nt * 4                      # K blocks (f32)
        b += 2 * BtC * C * 4                     # prior-map output blocks
        b += BtC * C * 4 + BtC * BtC * 4         # accumulator + mixing-matrix scratch
        b += BtC * nt * 4                        # matmul result temporary
        b += 4 * BtC * BtC * 4                   # iota / mask temporaries
        if in_itemsize < 4:
            b += BtC * nt * 4                    # in-kernel f32 upcast of the x tile
        return b + (2 << 20) <= budget

    if fits(N):
        return Bt, None
    nt_cands = sorted((n for n in range(128, N, 128) if N % n == 0), reverse=True)
    for nt in nt_cands:
        if fits(nt):
            return Bt, nt
    # TODO(synk): shapes with no 128-multiple divisor of N that fits VMEM would need
    # remainder-handling (masked / BoundedSlice) N-tiling; fall back to the smallest tile.
    return Bt, (nt_cands[-1] if nt_cands else None)


# -------------------------------------------------------------------------------- module
class PriorConvBlockPallas:
    """Pallas/JAX re-implementation of PriorConvBlock.forward (CPNet context prior)."""

    def __init__(self, in_channels: int, prior_channels: int, key=None):
        # forward() requires channels == prior_channels for its view/bmm to be valid.
        assert in_channels == prior_channels
        self.in_channels = in_channels
        self.prior_channels = prior_channels
        self._proj_cache = {}
        self._hw = _hw_info()
        # Conv/IN/ReLU sub-modules exist in the PyTorch __init__ but are never called in
        # forward(); weights are created deterministically only to mirror the module (unused).
        if key is None:
            key = jax.random.PRNGKey(0)
        k1, k2, k3 = jax.random.split(key, 3)
        self.prior_conv_w = 0.02 * jax.random.normal(
            k1, (prior_channels, in_channels, 1, 1, 1), jnp.float32)   # unused
        self.intra_conv_w = 0.02 * jax.random.normal(
            k2, (in_channels, prior_channels, 1, 1, 1), jnp.float32)   # unused
        self.inter_conv_w = 0.02 * jax.random.normal(
            k3, (in_channels, prior_channels, 1, 1, 1), jnp.float32)   # unused

    def _projection(self, C, H, W, D):
        ckey = (C, H, W, D)
        K = self._proj_cache.get(ckey)
        if K is None:
            K = jax.device_put(jnp.asarray(_build_prior_projection_np(C, H, W, D)))  # f32
            self._proj_cache[ckey] = K
        return K

    def __call__(self, x: jnp.ndarray, *, n_block=None):
        B, C, H, W, D = x.shape
        assert C == self.prior_channels
        N = H * W * D
        K = self._projection(C, H, W, D)                   # cached, device-resident, f32
        vmem_cap, num_cores, mxu_rows = self._hw
        Bt, Nt = _plan_tiles(B, C, N, jnp.dtype(x.dtype).itemsize,
                             vmem_cap, num_cores, mxu_rows)
        if n_block is not None:                            # testing / manual override
            assert n_block % 128 == 0 and N % n_block == 0
            Nt = None if n_block >= N else n_block
        return _prior_forward(x, K, Bt=Bt, Nt=Nt, vmem_limit=int(vmem_cap) * 3 // 4)


def _reference_numpy(x_np):
    """float64 numpy reference of the same math (independent of TPU matmul precision)."""
    x = np.asarray(x_np, dtype=np.float64)
    B, C, H, W, D = x.shape
    N = H * W * D
    K = _build_prior_projection_np(C, H, W, D).astype(np.float64)
    xf = x.reshape(B, C, N)
    pre = np.einsum("bcn,qn->bcq", xf, K)                  # (B, C, C)
    cpm = 1.0 / (1.0 + np.exp(-np.transpose(pre, (0, 2, 1))))
    out = np.einsum("bqc,bcn->bqn", cpm, xf) + xf
    return out.reshape(B, C, H, W, D), cpm


# ---------------------------------------------------------------------------------- main
if __name__ == "__main__":
    key = jax.random.PRNGKey(0)
    kx, kp = jax.random.split(key)

    B, C, H, W, D = 4, 8, 16, 16, 16                       # channels == prior_channels
    x = jax.random.normal(kx, (B, C, H, W, D), dtype=jnp.float32)

    block = PriorConvBlockPallas(in_channels=C, prior_channels=C, key=kp)
    ref_out, ref_cpm = _reference_numpy(np.asarray(x))

    # Default path (single N block per grid step).
    out, cpm = block(x)
    out = jax.block_until_ready(out)
    cpm = jax.block_until_ready(cpm)
    assert out.shape == (B, C, H, W, D) and cpm.shape == (B, C, C)
    assert out.dtype == jnp.float32 and cpm.dtype == jnp.float32
    # Tolerances cover whichever bf16-pass precision the MXU uses for f32 matmuls.
    assert np.allclose(np.asarray(cpm), ref_cpm, atol=5e-3, rtol=0.0)
    assert np.allclose(np.asarray(out), ref_out, atol=5e-2, rtol=3e-2)

    # Second call: reuses cached K and the compiled executable (no host rebuild / transfer).
    out2, _ = block(x)
    jax.block_until_ready(out2)
    assert np.allclose(np.asarray(out2), ref_out, atol=5e-2, rtol=3e-2)

    # Large-N code path: force the two-phase N-tiled grid and re-check against the reference.
    out3, cpm3 = block(x, n_block=1024)
    out3 = jax.block_until_ready(out3)
    cpm3 = jax.block_until_ready(cpm3)
    assert np.allclose(np.asarray(cpm3), ref_cpm, atol=5e-3, rtol=0.0)
    assert np.allclose(np.asarray(out3), ref_out, atol=5e-2, rtol=3e-2)

    print("KERNEL_OK")
</pallas_src>

<mosaic_0001>
module attributes {stable_mosaic.version = 11 : i64} {
  func.func @kernel(%arg0: i32, %arg1: memref<32x4096xf32, #tpu.memory_space<vmem>>, %arg2: memref<8x4096xf32, #tpu.memory_space<vmem>>, %arg3: memref<32x4096xf32, #tpu.memory_space<vmem>>, %arg4: memref<32x8xf32, #tpu.memory_space<vmem>>) attributes {dimension_semantics = [#tpu.dimension_semantics<parallel>], iteration_bounds = array<i64: 1>, scalar_prefetch = 0 : i64, scratch_operands = 0 : i64, tpu.core_type = #tpu.core_type<tc>, window_params = [{transform_indices = @transform_0, window_bounds = array<i64: 32, 4096>}, {pipeline_mode = #tpu.pipeline_mode<synchronous>, transform_indices = @transform_1, window_bounds = array<i64: 8, 4096>}, {transform_indices = @transform_2, window_bounds = array<i64: 32, 4096>}, {transform_indices = @transform_3, window_bounds = array<i64: 32, 8>}]} {
    %c0 = arith.constant 0 : index
    %c0_0 = arith.constant 0 : index
    %0 = vector.load %arg1[%c0, %c0_0] : memref<32x4096xf32, #tpu.memory_space<vmem>>, vector<32x4096xf32>
    %c0_1 = arith.constant 0 : index
    %c0_2 = arith.constant 0 : index
    %1 = vector.load %arg2[%c0_1, %c0_2] : memref<8x4096xf32, #tpu.memory_space<vmem>>, vector<8x4096xf32>
    %cst = arith.constant dense<0.000000e+00> : vector<32x8xf32>
    %2 = tpu.matmul %0, %1, %cst {dimension_numbers = #tpu.dot_dimension_numbers<[1], [1], [0], [0], [0, 0, 1, 0], [], []>} : vector<32x4096xf32>, vector<8x4096xf32>, vector<32x8xf32> -> vector<32x8xf32>
    %3 = arith.negf %2 : vector<32x8xf32>
    %4 = math.exp %3 : vector<32x8xf32>
    %cst_3 = arith.constant 1.000000e+00 : f32
    %5 = vector.broadcast %cst_3 : f32 to vector<32x8xf32>
    %6 = arith.addf %5, %4 : vector<32x8xf32>
    %7 = arith.divf %5, %6 : vector<32x8xf32>
    %c0_4 = arith.constant 0 : index
    %c0_5 = arith.constant 0 : index
    %8 = vector.load %arg4[%c0_4, %c0_5] : memref<32x8xf32, #tpu.memory_space<vmem>>, vector<32x8xf32>
    tpu.vector_store %arg4[%c0_4, %c0_5], %7 {strides = array<i32>} : memref<32x8xf32, #tpu.memory_space<vmem>>, vector<32x8xf32>,
    %9 = tpu.iota {dimensions = array<i32: 0>} : vector<32x8xi32>
    %10 = tpu.iota {dimensions = array<i32: 1>} : vector<32x8xi32>
    %11 = arith.cmpi eq, %9, %10 : vector<32x8xi32>
    %12 = arith.extui %11 : vector<32x8xi1> to vector<32x8xi32>
    %13 = arith.sitofp %12 : vector<32x8xi32> to vector<32x8xf32>
    %c8_i32 = arith.constant 8 : i32
    %14 = vector.broadcast %c8_i32 : i32 to vector<32x8xi32>
    %15 = arith.addi %10, %14 : vector<32x8xi32>
    %16 = arith.cmpi eq, %9, %15 : vector<32x8xi32>
    %17 = arith.extui %16 : vector<32x8xi1> to vector<32x8xi32>
    %18 = arith.sitofp %17 : vector<32x8xi32> to vector<32x8xf32>
    %19 = arith.addf %13, %18 : vector<32x8xf32>
    %c16_i32 = arith.constant 16 : i32
    %20 = vector.broadcast %c16_i32 : i32 to vector<32x8xi32>
    %21 = arith.addi %10, %20 : vector<32x8xi32>
    %22 = arith.cmpi eq, %9, %21 : vector<32x8xi32>
    %23 = arith.extui %22 : vector<32x8xi1> to vector<32x8xi32>
    %24 = arith.sitofp %23 : vector<32x8xi32> to vector<32x8xf32>
    %25 = arith.addf %19, %24 : vector<32x8xf32>
    %c24_i32 = arith.constant 24 : i32
    %26 = vector.broadcast %c24_i32 : i32 to vector<32x8xi32>
    %27 = arith.addi %10, %26 : vector<32x8xi32>
    %28 = arith.cmpi eq, %9, %27 : vector<32x8xi32>
    %29 = arith.extui %28 : vector<32x8xi1> to vector<32x8xi32>
    %30 = arith.sitofp %29 : vector<32x8xi32> to vector<32x8xf32>
    %31 = arith.addf %25, %30 : vector<32x8xf32>
    %cst_6 = arith.constant dense<0.000000e+00> : vector<32x32xf32>
    %32 = tpu.matmul %31, %7, %cst_6 {dimension_numbers = #tpu.dot_dimension_numbers<[1], [1], [0], [0], [0, 0, 1, 0], [], []>} : vector<32x8xf32>, vector<32x8xf32>, vector<32x32xf32> -> vector<32x32xf32>
    %33 = tpu.iota {dimensions = array<i32: 0>} : vector<32x32xi32>
    %34 = tpu.iota {dimensions = array<i32: 1>} : vector<32x32xi32>
    %35 = arith.cmpi eq, %33, %34 : vector<32x32xi32>
    %36 = arith.extui %35 : vector<32x32xi1> to vector<32x32xi32>
    %37 = arith.sitofp %36 : vector<32x32xi32> to vector<32x32xf32>
    %c8_i32_7 = arith.constant 8 : i32
    %38 = vector.broadcast %c8_i32_7 : i32 to vector<32x32xi32>
    %39 = arith.cmpi sge, %33, %38 : vector<32x32xi32>
    %40 = arith.extui %39 : vector<32x32xi1> to vector<32x32xi32>
    %c8_i32_8 = arith.constant 8 : i32
    %41 = vector.broadcast %c8_i32_8 : i32 to vector<32x32xi32>
    %42 = arith.cmpi sge, %34, %41 : vector<32x32xi32>
    %43 = arith.extui %42 : vector<32x32xi1> to vector<32x32xi32>
    %c16_i32_9 = arith.constant 16 : i32
    %44 = vector.broadcast %c16_i32_9 : i32 to vector<32x32xi32>
    %45 = arith.cmpi sge, %33, %44 : vector<32x32xi32>
    %46 = arith.extui %45 : vector<32x32xi1> to vector<32x32xi32>
    %47 = arith.addi %40, %46 : vector<32x32xi32>
    %c16_i32_10 = arith.constant 16 : i32
    %48 = vector.broadcast %c16_i32_10 : i32 to vector<32x32xi32>
    %49 = arith.cmpi sge, %34, %48 : vector<32x32xi32>
    %50 = arith.extui %49 : vector<32x32xi1> to vector<32x32xi32>
    %51 = arith.addi %43, %50 : vector<32x32xi32>
    %c24_i32_11 = arith.constant 24 : i32
    %52 = vector.broadcast %c24_i32_11 : i32 to vector<32x32xi32>
    %53 = arith.cmpi sge, %33, %52 : vector<32x32xi32>
    %54 = arith.extui %53 : vector<32x32xi1> to vector<32x32xi32>
    %55 = arith.addi %47, %54 : vector<32x32xi32>
    %c24_i32_12 = arith.constant 24 : i32
    %56 = vector.broadcast %c24_i32_12 : i32 to vector<32x32xi32>
    %57 = arith.cmpi sge, %34, %56 : vector<32x32xi32>
    %58 = arith.extui %57 : vector<32x32xi1> to vector<32x32xi32>
    %59 = arith.addi %51, %58 : vector<32x32xi32>
    %60 = arith.cmpi eq, %55, %59 : vector<32x32xi32>
    %cst_13 = arith.constant 0.000000e+00 : f32
    %61 = vector.broadcast %cst_13 : f32 to vector<32x32xf32>
    %62 = arith.select %60, %32, %61 : vector<32x32xi1>, vector<32x32xf32>
    %63 = arith.addf %62, %37 : vector<32x32xf32>
    %cst_14 = arith.constant dense<0.000000e+00> : vector<32x4096xf32>
    %64 = tpu.matmul %63, %0, %cst_14 {dimension_numbers = #tpu.dot_dimension_numbers<[1], [0], [0], [1], [0, 0, 1, 1], [], []>} : vector<32x32xf32>, vector<32x4096xf32>, vector<32x4096xf32> -> vector<32x4096xf32>
    %c0_15 = arith.constant 0 : index
    %c0_16 = arith.constant 0 : index
    %65 = vector.load %arg3[%c0_15, %c0_16] : memref<32x4096xf32, #tpu.memory_space<vmem>>, vector<32x4096xf32>
    tpu.vector_store %arg3[%c0_15, %c0_16], %64 {strides = array<i32>} : memref<32x4096xf32, #tpu.memory_space<vmem>>, vector<32x4096xf32>,
    return
  }
  func.func @transform_0(%arg0: i32) -> (i32, i32) {
    %c0_i32 = arith.constant 0 : i32
    %c0_i32_0 = arith.constant 0 : i32
    return %arg0, %c0_i32 : i32, i32
  }
  func.func @transform_1(%arg0: i32) -> (i32, i32) {
    %c0_i32 = arith.constant 0 : i32
    %c0_i32_0 = arith.constant 0 : i32
    %c0_i32_1 = arith.constant 0 : i32
    return %c0_i32, %c0_i32_0 : i32, i32
  }
  func.func @transform_2(%arg0: i32) -> (i32, i32) {
    %c0_i32 = arith.constant 0 : i32
    %c0_i32_0 = arith.constant 0 : i32
    return %arg0, %c0_i32 : i32, i32
  }
  func.func @transform_3(%arg0: i32) -> (i32, i32) {
    %c0_i32 = arith.constant 0 : i32
    %c0_i32_0 = arith.constant 0 : i32
    return %arg0, %c0_i32 : i32, i32
  }
}

</mosaic_0001>

<bundles_post_ra>
// kernel: _prior_forward.1
= control target key start
LH: loop header
LB: loop body
LE: loop exit
PB: predicated region body
PF: predicated region fallthrough
CT: control target
= control target key end

     0   :  { %vm1557_vm1 = vcmask 64512   ;;  %s5454_s1 = inlined_call_operand.vmem [shape: f32[8,4096], index: 1, kind: input, shape index: {}]   ;;  %s5455_s0 = inlined_call_operand.vmem [shape: f32[32,4096], index: 0, kind: input, shape index: {}]   ;;  %s5456_s3 = inlined_call_operand.vmem [shape: f32[32,8], index: 3, kind: output, shape index: {1}]   ;;  %s5457_s2 = inlined_call_operand.vmem [shape: f32[32,4096], index: 2, kind: output, shape index: {0}]  }
   0x1   :  { %v144_v0 = vld [vmem:[%s5454_s1 + $0x18] sm:$0xff]  ;;  %v143_v1 = vld [vmem:[%s5454_s1 + $0x10] sm:$0xff]  ;;  %v146_v5 = vld [vmem:[%s5454_s1 + $0x28] sm:$0xff] }
   0x2   :  { %v3783_v2 = vld [vmem:[%s5455_s0 + $0x18] sm:$0xff]  ;;  %258 = vmatprep.subr.mxu0 %v144_v0  ;;  %v3794_v4 = vld [vmem:[%s5455_s0 + $0x10] sm:$0xff]  ;;  %v145_v7 = vld [vmem:[%s5454_s1 + $0x20] sm:$0xff] }
   0x3   :  { %v3788_v3 = vld [vmem:[%s5455_s0 + $0x118] sm:$0xff]  ;;  %322 = vmatprep.mubr.f32.mxu0 %v3783_v2  ;;  %259 = vmatpush1.xpose.msra.mxu0 %v143_v1  ;;  %v3807_v8 = vld [vmem:[%s5455_s0 + $0x110] sm:$0xff]  ;;  %v3838_v16 = vld [vmem:[%s5455_s0 + $0x28] sm:$0xff] }
   0x4   :  { %v3812_v9 = vld [vmem:[%s5455_s0 + $0x218] sm:$0xff]  ;;  %343 = vmatprep.subr.mxu0 %v146_v5  ;;  %v3819_v11 = vld [vmem:[%s5455_s0 + $0x210] sm:$0xff]  ;;  %v3847_v18 = vld [vmem:[%s5455_s0 + $0x20] sm:$0xff] }
   0x5   :  { %v3824_v12 = vld [vmem:[%s5455_s0 + $0x318] sm:$0xff]  ;;  %v3829_v13 = vld [vmem:[%s5455_s0 + $0x310] sm:$0xff]  ;;  %v3852_v19 = vld [vmem:[%s5455_s0 + $0x128] sm:$0xff] }
   0x6   :  { %v148_v17 = vld [vmem:[%s5454_s1 + $0x38] sm:$0xff]  ;;  %323 = vmatmul.mubr.f32.vlgmr.msra.gmra.mrb[0].mxu0 %v3794_v4  ;;  %v3857_v20 = vld [vmem:[%s5455_s0 + $0x120] sm:$0xff]  ;;  %v3867_v23 = vld [vmem:[%s5455_s0 + $0x228] sm:$0xff] }
   0x7   :  { %344 = vmatpush1.xpose.msra.mxu0 %v145_v7  ;;  %327 = vmatprep.mubr.f32.mxu0 %v3788_v3  ;;  %v3872_v24 = vld [vmem:[%s5455_s0 + $0x328] sm:$0xff]  ;;  %v3877_v25 = vld [vmem:[%s5455_s0 + $0x220] sm:$0xff]  ;;  %v3891_v29 = vld [vmem:[%s5455_s0 + $0x38] sm:$0xff] }
   0x8   :  { %428 = vmatprep.subr.mxu0 %v148_v17  ;;  %v3884_v27 = vld [vmem:[%s5455_s0 + $0x320] sm:$0xff]  ;;  %v3896_v30 = vld [vmem:[%s5455_s0 + $0x138] sm:$0xff]  ;;  %v3902_v31 = vld [vmem:[%s5455_s0 + $0x30] sm:$0xff] }
   0x9   :  { %v3909_v33 = vld [vmem:[%s5455_s0 + $0x130] sm:$0xff]  ;;  %v3914_v34 = vld [vmem:[%s5455_s0 + $0x238] sm:$0xff]  ;;  %v3941_v41 = vld [vmem:[%s5455_s0 + $0x48] sm:$0xff] }
   0xa   :  { %328 = vmatmul.mubr.f32.gmra.mrb[2].mxu0 %v3807_v8  ;;  %v3922_v36 = vld [vmem:[%s5455_s0 + $0x230] sm:$0xff]  ;;  %v3927_v37 = vld [vmem:[%s5455_s0 + $0x338] sm:$0xff]  ;;  %v3946_v42 = vld [vmem:[%s5455_s0 + $0x40] sm:$0xff] }
   0xb   :  { %332 = vmatprep.mubr.f32.mxu0 %v3812_v9  ;;  %v3932_v38 = vld [vmem:[%s5455_s0 + $0x330] sm:$0xff]  ;;  %v3951_v43 = vld [vmem:[%s5455_s0 + $0x148] sm:$0xff]  ;;  %v3956_v44 = vld [vmem:[%s5455_s0 + $0x140] sm:$0xff] }
   0xc   :  { %v3961_v45 = vld [vmem:[%s5455_s0 + $0x248] sm:$0xff]  ;;  %v3971_v48 = vld [vmem:[%s5455_s0 + $0x240] sm:$0xff]  ;;  %v3991_v53 = vld [vmem:[%s5455_s0 + $0x58] sm:$0xff] }
   0xd   :  { %5541 = vst [vmem:[#allocation2_spill] sm:$0xff] %v3971_v48  ;;  %v3976_v49 = vld [vmem:[%s5455_s0 + $0x348] sm:$0xff]  ;;  %v3981_v50 = vld [vmem:[%s5455_s0 + $0x340] sm:$0xff]  ;;  %5542 = vst [vmem:[#allocation3_spill] sm:$0xff] %v3991_v53 }
   0xe   :  { %333 = vmatmul.mubr.f32.gmra.mrb[4].mxu0 %v3819_v11  ;;  %v3996_v54 = vld [vmem:[%s5455_s0 + $0x50] sm:$0xff]  ;;  %v4001_v55 = vld [vmem:[%s5455_s0 + $0x158] sm:$0xff]  ;;  %v150_v5 = vld [vmem:[%s5454_s1 + $0x48] sm:$0xff] }
   0xf   :  { %337 = vmatprep.mubr.f32.mxu0 %v3824_v12  ;;  %5543 = vst [vmem:[#allocation4_spill] sm:$0xff] %v3996_v54  ;;  %5544 = vst [vmem:[#allocation5_spill] sm:$0xff] %v4001_v55  ;;  %v4006_v56 = vld [vmem:[%s5455_s0 + $0x150] sm:$0xff]  ;;  %v4015_v59 = vld [vmem:[%s5455_s0 + $0x258] sm:$0xff] }
  0x10   :  { %5545 = vst [vmem:[#allocation6_spill] sm:$0xff] %v4006_v56  ;;  %5546 = vst [vmem:[#allocation7_spill] sm:$0xff] %v4015_v59  ;;  %v4020_v60 = vld [vmem:[%s5455_s0 + $0x358] sm:$0xff]  ;;  %v4026_v61 = vld [vmem:[%s5455_s0 + $0x250] sm:$0xff] }
  0x11   :  { %5547 = vst [vmem:[#allocation8_spill] sm:$0xff] %v4020_v60  ;;  %5548 = vst [vmem:[#allocation9_spill] sm:$0xff] %v4026_v61  ;;  %v4033_v63 = vld [vmem:[%s5455_s0 + $0x350] sm:$0xff]  ;;  %v149_v7 = vld [vmem:[%s5454_s1 + $0x40] sm:$0xff] }
  0x12   :  { %338 = vmatmul.mubr.f32.gmra.mrb[6].mxu0 %v3829_v13  ;;  %5549 = vst [vmem:[#allocation10_spill] sm:$0xff] %v4033_v63  ;;  %v147_v1 = vld [vmem:[%s5454_s1 + $0x30] sm:$0xff]  ;;  %v152_v17 = vld [vmem:[%s5454_s1 + $0x58] sm:$0xff]  ;;  %v158_v0 = vld [vmem:[%s5454_s1 + $0x88] sm:$0xff] }
  0x13   :  { %407 = vmatprep.mubr.f32.mxu0 %v3838_v16  ;;  %v4120_v62 = vld [vmem:[%s5455_s0 + $0x160] sm:$0xff]  ;;  %v4125_v58 = vld [vmem:[%s5455_s0 + $0x268] sm:$0xff]  ;;  %v4155_v47 = vld [vmem:[%s5455_s0 + $0x78] sm:$0xff] }
  0x14   :  { %5553 = vst [vmem:[#allocation14_spill] sm:$0xff] %v4120_v62  ;;  %5554 = vst [vmem:[#allocation15_spill] sm:$0xff] %v4125_v58  ;;  %v4137_v57 = vld [vmem:[%s5455_s0 + $0x368] sm:$0xff]  ;;  %v4147_v52 = vld [vmem:[%s5455_s0 + $0x360] sm:$0xff] }
  0x15   :  { %5556 = vst [vmem:[#allocation17_spill] sm:$0xff] %v4137_v57  ;;  %5557 = vst [vmem:[#allocation18_spill] sm:$0xff] %v4147_v52  ;;  %v141_v51 = vld [vmem:[%s5454_s1] sm:$0xff]  ;;  %v4161_v46 = vld [vmem:[%s5455_s0 + $0x8] sm:$0xff] }
  0x16   :  { %408 = vmatmul.mubr.f32.vlgmr.msra.gmra.mrb[0].mxu0 %v3847_v18  ;;  %5558 = vst [vmem:[#allocation19_spill] sm:$0xff] %v4155_v47  ;;  %v4171_v40 = vld [vmem:[%s5455_s0] sm:$0xff]  ;;  %237 = vmatprep.mubr.f32.mxu1 %v4161_v46  ;;  %v4188_v32 = vld [vmem:[%s5455_s0 + $0x178] sm:$0xff]  ;;  %v4205_v22 = vld [vmem:[%s5455_s0 + $0x170] sm:$0xff] }
  0x17   :  { %429 = vmatpush1.xpose.msra.mxu0 %v147_v1  ;;  %412 = vmatprep.mubr.f32.mxu0 %v3852_v19  ;;  %v151_v1 = vld [vmem:[%s5454_s1 + $0x50] sm:$0xff]  ;;  %v157_v35 = vld [vmem:[%s5454_s1 + $0x80] sm:$0xff]  ;;  %5560 = vst [vmem:[#allocation21_spill] sm:$0xff] %v4188_v32  ;;  %v160_v28 = vld [vmem:[%s5454_s1 + $0x98] sm:$0xff] }
  0x18   :  { %513 = vmatprep.subr.mxu0 %v150_v5  ;;  %v154_v5 = vld [vmem:[%s5454_s1 + $0x68] sm:$0xff]  ;;  %v4199_v26 = vld [vmem:[%s5455_s0 + $0x100] sm:$0xff]  ;;  %5561 = vst [vmem:[#allocation22_spill] sm:$0xff] %v4205_v22  ;;  %v4212_v15 = vld [vmem:[%s5455_s0 + $0x278] sm:$0xff] }
  0x19   :  { %5562 = vst [vmem:[#allocation23_spill] sm:$0xff] %v4212_v15  ;;  %v4224_v14 = vld [vmem:[%s5455_s0 + $0x200] sm:$0xff]  ;;  %v4236_v10 = vld [vmem:[%s5455_s0 + $0x378] sm:$0xff]  ;;  %v4243_v6 = vld [vmem:[%s5455_s0 + $0x308] sm:$0xff] }
  0x1a   :  { %413 = vmatmul.mubr.f32.gmra.mrb[2].mxu0 %v3857_v20  ;;  %5564 = vst [vmem:[#allocation25_spill] sm:$0xff] %v4236_v10  ;;  %v4248_v21 = vld [vmem:[%s5455_s0 + $0x300] sm:$0xff]  ;;  %v4254_v39 = vld [vmem:[%s5455_s0 + $0x370] sm:$0xff]  ;;  %vm4677_vm2 = vmpackc.low %vm1557_vm1, %vm1557_vm1 }
  0x1b   :  { %417 = vmatprep.mubr.f32.mxu0 %v3867_v23  ;;  %5565 = vst [vmem:[#allocation26_spill] sm:$0xff] %v4254_v39 }
  0x1e   :  { %418 = vmatmul.mubr.f32.gmra.mrb[4].mxu0 %v3877_v25 }
  0x1f   :  { %422 = vmatprep.mubr.f32.mxu0 %v3872_v24 }
  0x22   :  { %423 = vmatmul.mubr.f32.gmra.mrb[6].mxu0 %v3884_v27 }
  0x23   :  { %492 = vmatprep.mubr.f32.mxu0 %v3891_v29 }
  0x26   :  { %493 = vmatmul.mubr.f32.vlgmr.msra.gmra.mrb[0].mxu0 %v3902_v31 }
  0x27   :  { %514 = vmatpush1.xpose.msra.mxu0 %v149_v7  ;;  %497 = vmatprep.mubr.f32.mxu0 %v3896_v30  ;;  %v153_v7 = vld [vmem:[%s5454_s1 + $0x60] sm:$0xff] }
  0x28   :  { %598 = vmatprep.subr.mxu0 %v152_v17  ;;  %v156_v17 = vld [vmem:[%s5454_s1 + $0x78] sm:$0xff] }
  0x2a   :  { %498 = vmatmul.mubr.f32.gmra.mrb[2].mxu0 %v3909_v33 }
  0x2b   :  { %502 = vmatprep.mubr.f32.mxu0 %v3914_v34 }
  0x2e   :  { %503 = vmatmul.mubr.f32.gmra.mrb[4].mxu0 %v3922_v36 }
  0x2f   :  { %507 = vmatprep.mubr.f32.mxu0 %v3927_v37 }
  0x32   :  { %508 = vmatmul.mubr.f32.gmra.mrb[6].mxu0 %v3932_v38 }
  0x33   :  { %577 = vmatprep.mubr.f32.mxu0 %v3941_v41 }
  0x36   :  { %578 = vmatmul.mubr.f32.vlgmr.msra.gmra.mrb[0].mxu0 %v3946_v42 }
  0x37   :  { %599 = vmatpush1.xpose.msra.mxu0 %v151_v1  ;;  %582 = vmatprep.mubr.f32.mxu0 %v3951_v43  ;;  %v4095_v1 = vld [vmem:[%s5455_s0 + $0x68] sm:$0xff] }
  0x38   :  { %683 = vmatprep.subr.mxu0 %v154_v5  ;;  %5550 = vst [vmem:[#allocation11_spill] sm:$0xff] %v4095_v1  ;;  %v4102_v5 = vld [vmem:[%s5455_s0 + $0x60] sm:$0xff] }
  0x39   :  { %5551 = vst [vmem:[#allocation12_spill] sm:$0xff] %v4102_v5 }
  0x3a   :  { %583 = vmatmul.mubr.f32.gmra.mrb[2].mxu0 %v3956_v44 }
  0x3b   :  { %587 = vmatprep.mubr.f32.mxu0 %v3961_v45 }
  0x3e   :  { %588 = vmatmul.mubr.f32.gmra.mrb[4].mxu0 %v3971_v48 }
  0x3f   :  { %592 = vmatprep.mubr.f32.mxu0 %v3976_v49 }
  0x42   :  { %593 = vmatmul.mubr.f32.gmra.mrb[6].mxu0 %v3981_v50 }
  0x43   :  { %662 = vmatprep.mubr.f32.mxu0 %v3991_v53 }
  0x46   :  { %663 = vmatmul.mubr.f32.vlgmr.msra.gmra.mrb[0].mxu0 %v3996_v54 }
  0x47   :  { %684 = vmatpush1.xpose.msra.mxu0 %v153_v7  ;;  %667 = vmatprep.mubr.f32.mxu0 %v4001_v55  ;;  %v155_v7 = vld [vmem:[%s5454_s1 + $0x70] sm:$0xff] }
  0x48   :  { %768 = vmatprep.subr.mxu0 %v156_v17  ;;  %v4110_v17 = vld [vmem:[%s5455_s0 + $0x168] sm:$0xff] }
  0x49   :  { %5552 = vst [vmem:[#allocation13_spill] sm:$0xff] %v4110_v17 }
  0x4a   :  { %668 = vmatmul.mubr.f32.gmra.mrb[2].mxu0 %v4006_v56 }
  0x4b   :  { %672 = vmatprep.mubr.f32.mxu0 %v4015_v59 }
  0x4e   :  { %673 = vmatmul.mubr.f32.gmra.mrb[4].mxu0 %v4026_v61 }
  0x4f   :  { %677 = vmatprep.mubr.f32.mxu0 %v4020_v60  ;;  %v1562_v60 = vlaneseq }
  0x52   :  { %678 = vmatmul.mubr.f32.gmra.mrb[6].mxu0 %v4033_v63 }
  0x53   :  { %747 = vmatprep.mubr.f32.mxu0 %v4095_v1 }
  0x56   :  { %748 = vmatmul.mubr.f32.vlgmr.msra.gmra.mrb[0].mxu0 %v4102_v5 }
  0x57   :  { %769 = vmatpush1.xpose.msra.mxu0 %v155_v7  ;;  %752 = vmatprep.mubr.f32.mxu0 %v4110_v17  ;;  %v4132_v7 = vld [vmem:[%s5455_s0 + $0x260] sm:$0xff]  ;;  %v1563_v17 = vshrl.u32 %v1562_v60, 7 }
  0x58   :  { %853 = vmatprep.subr.mxu0 %v158_v0  ;;  %5555 = vst [vmem:[#allocation16_spill] sm:$0xff] %v4132_v7  ;;  %v142_v0 = vld [vmem:[%s5454_s1 + $0x8] sm:$0xff] }
  0x59   :  { %173 = vmatprep.subr.mxu1 %v142_v0  ;;  %v4166_v0 = vld [vmem:[%s5455_s0 + $0x108] sm:$0xff] }
  0x5a   :  { %753 = vmatmul.mubr.f32.gmra.mrb[2].mxu0 %v4120_v62  ;;  %174 = vmatpush1.xpose.msra.mxu1 %v141_v51  ;;  %v4177_v51 = vld [vmem:[%s5455_s0 + $0x70] sm:$0xff] }
  0x5b   :  { %757 = vmatprep.mubr.f32.mxu0 %v4125_v58  ;;  %5559 = vst [vmem:[#allocation20_spill] sm:$0xff] %v4177_v51 }
  0x5d   :  { %238 = vmatmul.mubr.f32.vlgmr.msra.gmra.mrb[0].mxu1 %v4171_v40 }
  0x5e   :  { %758 = vmatmul.mubr.f32.gmra.mrb[4].mxu0 %v4132_v7  ;;  %242 = vmatprep.mubr.f32.mxu1 %v4166_v0  ;;  %v139_v7 = vld [vmem:[%s5455_s0 + $0x3f0] sm:$0xff] }
  0x5f   :  { %762 = vmatprep.mubr.f32.mxu0 %v4137_v57 }
  0x61   :  { %243 = vmatmul.mubr.f32.gmra.mrb[2].mxu1 %v4199_v26 }
  0x62   :  { %763 = vmatmul.mubr.f32.gmra.mrb[6].mxu0 %v4147_v52 }
  0x63   :  { %832 = vmatprep.mubr.f32.mxu0 %v4155_v47  ;;  %v4622_v47 = vld [vmem:[%s5455_s0 + $0x2e8] sm:$0xff] }
  0x64   :  { %5618 = vst [vmem:[#allocation79_spill] sm:$0xff] %v4622_v47 }
  0x66   :  { %833 = vmatmul.mubr.f32.vlgmr.msra.gmra.mrb[0].mxu0 %v4177_v51  ;;  %v4295_v51 = vld [vmem:[%s5455_s0 + $0x288] sm:$0xff] }
  0x67   :  { %854 = vmatpush1.xpose.msra.mxu0 %v157_v35  ;;  %837 = vmatprep.mubr.f32.mxu0 %v4188_v32  ;;  %v4219_v35 = vld [vmem:[%s5455_s0 + $0x208] sm:$0xff]  ;;  %5570 = vst [vmem:[#allocation31_spill] sm:$0xff] %v4295_v51  ;;  %v4617_v32 = vld [vmem:[%s5455_s0 + $0x1e0] sm:$0xff] }
  0x68   :  { %938 = vmatprep.subr.mxu0 %v160_v28  ;;  %v4230_v28 = vld [vmem:[%s5455_s0 + $0x270] sm:$0xff]  ;;  %247 = vmatprep.mubr.f32.mxu1 %v4219_v35  ;;  %5617 = vst [vmem:[#allocation78_spill] sm:$0xff] %v4617_v32 }
  0x69   :  { %5563 = vst [vmem:[#allocation24_spill] sm:$0xff] %v4230_v28  ;;  %248 = vmatmul.mubr.f32.gmra.mrb[4].mxu1 %v4224_v14 }
  0x6a   :  { %838 = vmatmul.mubr.f32.gmra.mrb[2].mxu0 %v4205_v22  ;;  %252 = vmatprep.mubr.f32.mxu1 %v4243_v6  ;;  %v4264_v22 = vld [vmem:[%s5455_s0 + $0x88] sm:$0xff] }
  0x6b   :  { %842 = vmatprep.mubr.f32.mxu0 %v4212_v15  ;;  %5566 = vst [vmem:[#allocation27_spill] sm:$0xff] %v4264_v22  ;;  %v159_v15 = vld [vmem:[%s5454_s1 + $0x90] sm:$0xff] }
  0x6d   :  { %253 = vmatmul.mubr.f32.gmra.mrb[6].mxu1 %v4248_v21 }
  0x6e   :  { %843 = vmatmul.mubr.f32.gmra.mrb[4].mxu0 %v4230_v28  ;;  %v4280_v28 = vld [vmem:[%s5455_s0 + $0x188] sm:$0xff] }
  0x6f   :  { %847 = vmatprep.mubr.f32.mxu0 %v4236_v10  ;;  %v4272_v10 = vld [vmem:[%s5455_s0 + $0x80] sm:$0xff]  ;;  %5568 = vst [vmem:[#allocation29_spill] sm:$0xff] %v4280_v28 }
  0x70   :  { %5567 = vst [vmem:[#allocation28_spill] sm:$0xff] %v4272_v10 }
  0x72   :  { %848 = vmatmul.mubr.f32.gmra.mrb[6].mxu0 %v4254_v39  ;;  %v162_v39 = vld [vmem:[%s5454_s1 + $0xa8] sm:$0xff] }
  0x73   :  { %917 = vmatprep.mubr.f32.mxu0 %v4264_v22  ;;  %v4290_v22 = vld [vmem:[%s5455_s0 + $0x180] sm:$0xff] }
  0x74   :  { %5569 = vst [vmem:[#allocation30_spill] sm:$0xff] %v4290_v22 }
  0x76   :  { %918 = vmatmul.mubr.f32.vlgmr.msra.gmra.mrb[0].mxu0 %v4272_v10  ;;  %v4307_v10 = vld [vmem:[%s5455_s0 + $0x388] sm:$0xff] }
  0x77   :  { %939 = vmatpush1.xpose.msra.mxu0 %v159_v15  ;;  %922 = vmatprep.mubr.f32.mxu0 %v4280_v28  ;;  %v4302_v15 = vld [vmem:[%s5455_s0 + $0x280] sm:$0xff]  ;;  %5572 = vst [vmem:[#allocation33_spill] sm:$0xff] %v4307_v10  ;;  %v4349_v28 = vld [vmem:[%s5455_s0 + $0x298] sm:$0xff] }
  0x78   :  { %1023 = vmatprep.subr.mxu0 %v162_v39  ;;  %5571 = vst [vmem:[#allocation32_spill] sm:$0xff] %v4302_v15  ;;  %v4314_v39 = vld [vmem:[%s5455_s0 + $0x380] sm:$0xff]  ;;  %5578 = vst [vmem:[#allocation39_spill] sm:$0xff] %v4349_v28 }
  0x79   :  { %5573 = vst [vmem:[#allocation34_spill] sm:$0xff] %v4314_v39 }
  0x7a   :  { %923 = vmatmul.mubr.f32.gmra.mrb[2].mxu0 %v4290_v22  ;;  %v4334_v22 = vld [vmem:[%s5455_s0 + $0x198] sm:$0xff] }
  0x7b   :  { %927 = vmatprep.mubr.f32.mxu0 %v4295_v51  ;;  %v4319_v51 = vld [vmem:[%s5455_s0 + $0x98] sm:$0xff]  ;;  %5576 = vst [vmem:[#allocation37_spill] sm:$0xff] %v4334_v22 }
  0x7c   :  { %5574 = vst [vmem:[#allocation35_spill] sm:$0xff] %v4319_v51 }
  0x7e   :  { %928 = vmatmul.mubr.f32.gmra.mrb[4].mxu0 %v4302_v15  ;;  %v4326_v15 = vld [vmem:[%s5455_s0 + $0x90] sm:$0xff] }
  0x7f   :  { %932 = vmatprep.mubr.f32.mxu0 %v4307_v10  ;;  %5575 = vst [vmem:[#allocation36_spill] sm:$0xff] %v4326_v15  ;;  %v161_v10 = vld [vmem:[%s5454_s1 + $0xa0] sm:$0xff] }
  0x82   :  { %933 = vmatmul.mubr.f32.gmra.mrb[6].mxu0 %v4314_v39  ;;  %v164_v39 = vld [vmem:[%s5454_s1 + $0xb8] sm:$0xff] }
  0x83   :  { %1002 = vmatprep.mubr.f32.mxu0 %v4319_v51  ;;  %v4344_v51 = vld [vmem:[%s5455_s0 + $0x190] sm:$0xff] }
  0x84   :  { %5577 = vst [vmem:[#allocation38_spill] sm:$0xff] %v4344_v51 }
  0x86   :  { %1003 = vmatmul.mubr.f32.vlgmr.msra.gmra.mrb[0].mxu0 %v4326_v15  ;;  %v4361_v15 = vld [vmem:[%s5455_s0 + $0x398] sm:$0xff] }
  0x87   :  { %1024 = vmatpush1.xpose.msra.mxu0 %v161_v10  ;;  %1007 = vmatprep.mubr.f32.mxu0 %v4334_v22  ;;  %v4356_v10 = vld [vmem:[%s5455_s0 + $0x290] sm:$0xff]  ;;  %5580 = vst [vmem:[#allocation41_spill] sm:$0xff] %v4361_v15  ;;  %v4403_v22 = vld [vmem:[%s5455_s0 + $0x2a8] sm:$0xff] }
  0x88   :  { %1108 = vmatprep.subr.mxu0 %v164_v39  ;;  %5579 = vst [vmem:[#allocation40_spill] sm:$0xff] %v4356_v10  ;;  %v4368_v39 = vld [vmem:[%s5455_s0 + $0x390] sm:$0xff]  ;;  %5586 = vst [vmem:[#allocation47_spill] sm:$0xff] %v4403_v22 }
  0x89   :  { %5581 = vst [vmem:[#allocation42_spill] sm:$0xff] %v4368_v39 }
  0x8a   :  { %1008 = vmatmul.mubr.f32.gmra.mrb[2].mxu0 %v4344_v51  ;;  %v4388_v51 = vld [vmem:[%s5455_s0 + $0x1a8] sm:$0xff] }
  0x8b   :  { %1012 = vmatprep.mubr.f32.mxu0 %v4349_v28  ;;  %v4373_v28 = vld [vmem:[%s5455_s0 + $0xa8] sm:$0xff]  ;;  %5584 = vst [vmem:[#allocation45_spill] sm:$0xff] %v4388_v51 }
  0x8c   :  { %5582 = vst [vmem:[#allocation43_spill] sm:$0xff] %v4373_v28 }
  0x8e   :  { %1013 = vmatmul.mubr.f32.gmra.mrb[4].mxu0 %v4356_v10  ;;  %v4380_v10 = vld [vmem:[%s5455_s0 + $0xa0] sm:$0xff] }
  0x8f   :  { %1017 = vmatprep.mubr.f32.mxu0 %v4361_v15  ;;  %5583 = vst [vmem:[#allocation44_spill] sm:$0xff] %v4380_v10  ;;  %v163_v15 = vld [vmem:[%s5454_s1 + $0xb0] sm:$0xff] }
  0x92   :  { %1018 = vmatmul.mubr.f32.gmra.mrb[6].mxu0 %v4368_v39  ;;  %v166_v39 = vld [vmem:[%s5454_s1 + $0xc8] sm:$0xff] }
  0x93   :  { %1087 = vmatprep.mubr.f32.mxu0 %v4373_v28  ;;  %v4398_v28 = vld [vmem:[%s5455_s0 + $0x1a0] sm:$0xff] }
  0x94   :  { %5585 = vst [vmem:[#allocation46_spill] sm:$0xff] %v4398_v28 }
  0x96   :  { %1088 = vmatmul.mubr.f32.vlgmr.msra.gmra.mrb[0].mxu0 %v4380_v10  ;;  %v4415_v10 = vld [vmem:[%s5455_s0 + $0x3a8] sm:$0xff] }
  0x97   :  { %1109 = vmatpush1.xpose.msra.mxu0 %v163_v15  ;;  %1092 = vmatprep.mubr.f32.mxu0 %v4388_v51  ;;  %v4410_v15 = vld [vmem:[%s5455_s0 + $0x2a0] sm:$0xff]  ;;  %5588 = vst [vmem:[#allocation49_spill] sm:$0xff] %v4415_v10  ;;  %v4457_v51 = vld [vmem:[%s5455_s0 + $0x2b8] sm:$0xff] }
  0x98   :  { %1193 = vmatprep.subr.mxu0 %v166_v39  ;;  %5587 = vst [vmem:[#allocation48_spill] sm:$0xff] %v4410_v15  ;;  %v4422_v39 = vld [vmem:[%s5455_s0 + $0x3a0] sm:$0xff]  ;;  %5594 = vst [vmem:[#allocation55_spill] sm:$0xff] %v4457_v51 }
  0x99   :  { %5589 = vst [vmem:[#allocation50_spill] sm:$0xff] %v4422_v39 }
  0x9a   :  { %1093 = vmatmul.mubr.f32.gmra.mrb[2].mxu0 %v4398_v28  ;;  %v4442_v28 = vld [vmem:[%s5455_s0 + $0x1b8] sm:$0xff] }
  0x9b   :  { %1097 = vmatprep.mubr.f32.mxu0 %v4403_v22  ;;  %v4427_v22 = vld [vmem:[%s5455_s0 + $0xb8] sm:$0xff]  ;;  %5592 = vst [vmem:[#allocation53_spill] sm:$0xff] %v4442_v28 }
  0x9c   :  { %5590 = vst [vmem:[#allocation51_spill] sm:$0xff] %v4427_v22 }
  0x9e   :  { %1098 = vmatmul.mubr.f32.gmra.mrb[4].mxu0 %v4410_v15  ;;  %v4434_v15 = vld [vmem:[%s5455_s0 + $0xb0] sm:$0xff] }
  0x9f   :  { %1102 = vmatprep.mubr.f32.mxu0 %v4415_v10  ;;  %5591 = vst [vmem:[#allocation52_spill] sm:$0xff] %v4434_v15  ;;  %v165_v10 = vld [vmem:[%s5454_s1 + $0xc0] sm:$0xff] }
  0xa2   :  { %1103 = vmatmul.mubr.f32.gmra.mrb[6].mxu0 %v4422_v39  ;;  %v168_v39 = vld [vmem:[%s5454_s1 + $0xd8] sm:$0xff] }
  0xa3   :  { %1172 = vmatprep.mubr.f32.mxu0 %v4427_v22  ;;  %v4452_v22 = vld [vmem:[%s5455_s0 + $0x1b0] sm:$0xff] }
  0xa4   :  { %5593 = vst [vmem:[#allocation54_spill] sm:$0xff] %v4452_v22 }
  0xa6   :  { %1173 = vmatmul.mubr.f32.vlgmr.msra.gmra.mrb[0].mxu0 %v4434_v15  ;;  %v4469_v15 = vld [vmem:[%s5455_s0 + $0x3b8] sm:$0xff] }
  0xa7   :  { %1194 = vmatpush1.xpose.msra.mxu0 %v165_v10  ;;  %1177 = vmatprep.mubr.f32.mxu0 %v4442_v28  ;;  %v4464_v10 = vld [vmem:[%s5455_s0 + $0x2b0] sm:$0xff]  ;;  %5596 = vst [vmem:[#allocation57_spill] sm:$0xff] %v4469_v15  ;;  %v4511_v28 = vld [vmem:[%s5455_s0 + $0x2c8] sm:$0xff] }
  0xa8   :  { %1278 = vmatprep.subr.mxu0 %v168_v39  ;;  %5595 = vst [vmem:[#allocation56_spill] sm:$0xff] %v4464_v10  ;;  %v4476_v39 = vld [vmem:[%s5455_s0 + $0x3b0] sm:$0xff]  ;;  %5602 = vst [vmem:[#allocation63_spill] sm:$0xff] %v4511_v28 }
  0xa9   :  { %5597 = vst [vmem:[#allocation58_spill] sm:$0xff] %v4476_v39 }
  0xaa   :  { %1178 = vmatmul.mubr.f32.gmra.mrb[2].mxu0 %v4452_v22  ;;  %v4496_v22 = vld [vmem:[%s5455_s0 + $0x1c8] sm:$0xff] }
  0xab   :  { %1182 = vmatprep.mubr.f32.mxu0 %v4457_v51  ;;  %v4481_v51 = vld [vmem:[%s5455_s0 + $0xc8] sm:$0xff]  ;;  %5600 = vst [vmem:[#allocation61_spill] sm:$0xff] %v4496_v22 }
  0xac   :  { %5598 = vst [vmem:[#allocation59_spill] sm:$0xff] %v4481_v51 }
  0xae   :  { %1183 = vmatmul.mubr.f32.gmra.mrb[4].mxu0 %v4464_v10  ;;  %v4488_v10 = vld [vmem:[%s5455_s0 + $0xc0] sm:$0xff] }
  0xaf   :  { %1187 = vmatprep.mubr.f32.mxu0 %v4469_v15  ;;  %5599 = vst [vmem:[#allocation60_spill] sm:$0xff] %v4488_v10  ;;  %v167_v15 = vld [vmem:[%s5454_s1 + $0xd0] sm:$0xff] }
  0xb2   :  { %1188 = vmatmul.mubr.f32.gmra.mrb[6].mxu0 %v4476_v39  ;;  %v170_v39 = vld [vmem:[%s5454_s1 + $0xe8] sm:$0xff] }
  0xb3   :  { %1257 = vmatprep.mubr.f32.mxu0 %v4481_v51  ;;  %v4506_v51 = vld [vmem:[%s5455_s0 + $0x1c0] sm:$0xff] }
  0xb4   :  { %5601 = vst [vmem:[#allocation62_spill] sm:$0xff] %v4506_v51 }
  0xb6   :  { %1258 = vmatmul.mubr.f32.vlgmr.msra.gmra.mrb[0].mxu0 %v4488_v10  ;;  %v4523_v10 = vld [vmem:[%s5455_s0 + $0x3c8] sm:$0xff] }
  0xb7   :  { %1279 = vmatpush1.xpose.msra.mxu0 %v167_v15  ;;  %1262 = vmatprep.mubr.f32.mxu0 %v4496_v22  ;;  %v4518_v15 = vld [vmem:[%s5455_s0 + $0x2c0] sm:$0xff]  ;;  %5604 = vst [vmem:[#allocation65_spill] sm:$0xff] %v4523_v10  ;;  %v4565_v22 = vld [vmem:[%s5455_s0 + $0x2d8] sm:$0xff] }
  0xb8   :  { %1363 = vmatprep.subr.mxu0 %v170_v39  ;;  %5603 = vst [vmem:[#allocation64_spill] sm:$0xff] %v4518_v15  ;;  %v4530_v39 = vld [vmem:[%s5455_s0 + $0x3c0] sm:$0xff]  ;;  %5610 = vst [vmem:[#allocation71_spill] sm:$0xff] %v4565_v22 }
  0xb9   :  { %5605 = vst [vmem:[#allocation66_spill] sm:$0xff] %v4530_v39 }
  0xba   :  { %1263 = vmatmul.mubr.f32.gmra.mrb[2].mxu0 %v4506_v51  ;;  %v4550_v51 = vld [vmem:[%s5455_s0 + $0x1d8] sm:$0xff] }
  0xbb   :  { %1267 = vmatprep.mubr.f32.mxu0 %v4511_v28  ;;  %v4535_v28 = vld [vmem:[%s5455_s0 + $0xd8] sm:$0xff]  ;;  %5608 = vst [vmem:[#allocation69_spill] sm:$0xff] %v4550_v51 }
  0xbc   :  { %5606 = vst [vmem:[#allocation67_spill] sm:$0xff] %v4535_v28 }
  0xbe   :  { %1268 = vmatmul.mubr.f32.gmra.mrb[4].mxu0 %v4518_v15  ;;  %v4542_v15 = vld [vmem:[%s5455_s0 + $0xd0] sm:$0xff] }
  0xbf   :  { %1272 = vmatprep.mubr.f32.mxu0 %v4523_v10  ;;  %5607 = vst [vmem:[#allocation68_spill] sm:$0xff] %v4542_v15  ;;  %v169_v10 = vld [vmem:[%s5454_s1 + $0xe0] sm:$0xff] }
  0xc2   :  { %1273 = vmatmul.mubr.f32.gmra.mrb[6].mxu0 %v4530_v39  ;;  %v172_v39 = vld [vmem:[%s5454_s1 + $0xf8] sm:$0xff] }
  0xc3   :  { %1342 = vmatprep.mubr.f32.mxu0 %v4535_v28  ;;  %v4560_v28 = vld [vmem:[%s5455_s0 + $0x1d0] sm:$0xff] }
  0xc4   :  { %5609 = vst [vmem:[#allocation70_spill] sm:$0xff] %v4560_v28 }
  0xc6   :  { %1343 = vmatmul.mubr.f32.vlgmr.msra.gmra.mrb[0].mxu0 %v4542_v15  ;;  %v4577_v15 = vld [vmem:[%s5455_s0 + $0x3d8] sm:$0xff] }
  0xc7   :  { %1364 = vmatpush1.xpose.msra.mxu0 %v169_v10  ;;  %1347 = vmatprep.mubr.f32.mxu0 %v4550_v51  ;;  %v4572_v10 = vld [vmem:[%s5455_s0 + $0x2d0] sm:$0xff]  ;;  %5612 = vst [vmem:[#allocation73_spill] sm:$0xff] %v4577_v15 }
  0xc8   :  { %1448 = vmatprep.subr.mxu0 %v172_v39  ;;  %5611 = vst [vmem:[#allocation72_spill] sm:$0xff] %v4572_v10  ;;  %v4584_v39 = vld [vmem:[%s5455_s0 + $0x3d0] sm:$0xff] }
  0xc9   :  { %5613 = vst [vmem:[#allocation74_spill] sm:$0xff] %v4584_v39  ;;  %v171_v51 = vld [vmem:[%s5454_s1 + $0xf0] sm:$0xff] }
  0xca   :  { %1348 = vmatmul.mubr.f32.gmra.mrb[2].mxu0 %v4560_v28  ;;  %v76_v28 = vld [vmem:[%s5455_s0 + $0x1f8] sm:$0xff] }
  0xcb   :  { %1352 = vmatprep.mubr.f32.mxu0 %v4565_v22  ;;  %v4589_v22 = vld [vmem:[%s5455_s0 + $0xe8] sm:$0xff] }
  0xcc   :  { %5614 = vst [vmem:[#allocation75_spill] sm:$0xff] %v4589_v22 }
  0xce   :  { %1353 = vmatmul.mubr.f32.gmra.mrb[4].mxu0 %v4572_v10  ;;  %v4596_v10 = vld [vmem:[%s5455_s0 + $0xe0] sm:$0xff] }
  0xcf   :  { %1357 = vmatprep.mubr.f32.mxu0 %v4577_v15  ;;  %5615 = vst [vmem:[#allocation76_spill] sm:$0xff] %v4596_v10  ;;  %v44_v15 = vld [vmem:[%s5455_s0 + $0xf8] sm:$0xff] }
  0xd2   :  { %1358 = vmatmul.mubr.f32.gmra.mrb[6].mxu0 %v4584_v39  ;;  %v3610_v39 = vpack.c.bf16 %v76_v28, %v44_v15 }
  0xd3   :  { %1427 = vmatprep.mubr.f32.mxu0 %v4589_v22  ;;  %v4610_v22 = vld [vmem:[%s5455_s0 + $0x1e8] sm:$0xff] }
  0xd4   :  { %5616 = vst [vmem:[#allocation77_spill] sm:$0xff] %v4610_v22 }
  0xd6   :  { %1428 = vmatmul.mubr.f32.vlgmr.msra.gmra.mrb[0].mxu0 %v4596_v10  ;;  %v4634_v10 = vld [vmem:[%s5455_s0 + $0x3e8] sm:$0xff] }
  0xd7   :  { %1449 = vmatpush1.xpose.msra.mxu0 %v171_v51  ;;  %1432 = vmatprep.mubr.f32.mxu0 %v4610_v22  ;;  %v4629_v51 = vld [vmem:[%s5455_s0 + $0x2e0] sm:$0xff]  ;;  %5620 = vst [vmem:[#allocation81_spill] sm:$0xff] %v4634_v10 }
  0xd8   :  { %3611 = vmatprep.subr.bf16.mxu0 %v3610_v39  ;;  %5619 = vst [vmem:[#allocation80_spill] sm:$0xff] %v4629_v51  ;;  %v4641_v39 = vld [vmem:[%s5455_s0 + $0x3e0] sm:$0xff] }
  0xd9   :  { %5621 = vst [vmem:[#allocation82_spill] sm:$0xff] %v4641_v39 }
  0xda   :  { %1433 = vmatmul.mubr.f32.gmra.mrb[2].mxu0 %v4617_v32  ;;  %v75_v32 = vld [vmem:[%s5455_s0 + $0x1f0] sm:$0xff] }
  0xdb   :  { %1437 = vmatprep.mubr.f32.mxu0 %v4622_v47  ;;  %v43_v47 = vld [vmem:[%s5455_s0 + $0xf0] sm:$0xff] }
  0xdc   :  { %v3612_v22 = vpack.c.bf16 %v75_v32, %v43_v47 }
  0xde   :  { %1438 = vmatmul.mubr.f32.gmra.mrb[4].mxu0 %v4629_v51  ;;  %v108_v51 = vld [vmem:[%s5455_s0 + $0x2f8] sm:$0xff] }
  0xdf   :  { %1442 = vmatprep.mubr.f32.mxu0 %v4634_v10  ;;  %v140_v10 = vld [vmem:[%s5455_s0 + $0x3f8] sm:$0xff] }
  0xe0   :  { %v3614_v52 = vpack.c.bf16 %v140_v10, %v108_v51 }
  0xe2   :  { %1443 = vmatmul.mubr.f32.gmra.mrb[6].mxu0 %v4641_v39  ;;  %v107_v39 = vld [vmem:[%s5455_s0 + $0x2f0] sm:$0xff] }
  0xe3   :  { %1512 = vmatprep.mubr.f32.mxu0 %v44_v15  ;;  %v3616_v15 = vpack.c.bf16 %v139_v7, %v107_v39 }
  0xe6   :  { %1513 = vmatmul.mubr.f32.vlgmr.msra.gmra.mrb[0].mxu0 %v43_v47 }
  0xe7   :  { %1517 = vmatprep.mubr.f32.mxu0 %v76_v28  ;;  %3613 = vmatpush1.bf16.msra.mxu0 %v3612_v22  ;;  %v4662_v28 = vand.u32 127, %v1562_v60  ;;  %v5535_v22 = vmov 0.0  }
  0xe8   :  { %3615 = vmatprep.subr.bf16.mxu0 %v3614_v52 }
  0xe9   :  { %vm1569_vm0 = vcmp.eq.s32.totalorder %v1563_v17, %v4662_v28  ;;  %vm1749_vm12 = vcmp.ge.s32.totalorder %v4662_v28, 8  ;;  %vm1763_vm13 = vcmp.ge.s32.totalorder %v4662_v28, 16  ;;  %vm1778_vm14 = vcmp.ge.s32.totalorder %v4662_v28, 24 }
  0xea   :  { %1518 = vmatmul.mubr.f32.gmra.mrb[2].mxu0 %v75_v32  ;;  %v4667_v32 = vsel %vm1569_vm0, 1.0, %v5535_v22 }
  0xeb   :  { %1522 = vmatprep.mubr.f32.mxu0 %v108_v51  ;;  %3617 = vmatpush1.bf16.msra.mxu0 %v3616_v15 }
  0xec   :  { %3472 = vmatprep.mubr.msk.f32.mxu1 %vm1557_vm1, %v4667_v32 }
  0xee   :  { %1523 = vmatmul.mubr.f32.gmra.mrb[4].mxu0 %v107_v39 }
  0xef   :  { %1527 = vmatprep.mubr.f32.mxu0 %v140_v10 }
  0xf2   :  { %1528 = vmatmul.mubr.f32.gmra.mrb[6].mxu0 %v139_v7 }
  0xf3   :  { %3205 = vmatprep.mubr.f32.mxu0 %v5535_v22 }
 0x130   :  { %v239_v57 = vpop.f32.mrb[0].mxu1 }
 0x131   :  { %v241_v47 = vpop.f32.mrb[1].mxu1 }
 0x134   :  { %v244_v58 = vpop.f32.mrb[2].mxu1 }
 0x135   :  { %v246_v62 = vpop.f32.mrb[3].mxu1 }
 0x13c   :  { %v249_v5 = vpop.f32.mrb[4].mxu1 }
 0x13d   :  { %v251_v61 = vpop.f32.mrb[5].mxu1 }
 0x140   :  { %v254_v63 = vpop.f32.mrb[6].mxu1 }
 0x141   :  { %v256_v59 = vpop.f32.mrb[7].mxu1 }
 0x1b9   :  { %v1514_v52 = vpop.f32.mrb[0].mxu0 }
 0x1ba   :  { %v3618_v61 = vadd.f32 %v1514_v52, %v239_v57  ;;  %v1516_v62 = vpop.f32.mrb[1].mxu0 }
 0x1bc   :  { %v3366_v59 = vmul.f32 -1.442695, %v3618_v61 }
 0x1bd   :  { %v1519_v7 = vpop.f32.mrb[2].mxu0 }
 0x1be   :  { %3736 = vpow2.f32 %v3366_v59  ;;  %v3619_v60 = vadd.f32 %v1519_v7, %v244_v58  ;;  %v1521_v10 = vpop.f32.mrb[3].mxu0  ;;  %v1598_v7 = vadd.s32 16, %v4662_v28 }
 0x1c0   :  { %v3367_v51 = vmul.f32 -1.442695, %v3619_v60  ;;  %v5624_v60 = vmov 0.0  }
 0x1c1   :  { %v1524_v39 = vpop.f32.mrb[4].mxu0 }
 0x1c2   :  { %3738 = vpow2.f32 %v3367_v51  ;;  %v3620_v15 = vadd.f32 %v1524_v39, %v249_v5  ;;  %v1526_v47 = vpop.f32.mrb[5].mxu0 }
 0x1c4   :  { %v3368_v1 = vmul.f32 -1.442695, %v3620_v15 }
 0x1c5   :  { %v1529_v54 = vpop.f32.mrb[6].mxu0 }
 0x1c6   :  { %3740 = vpow2.f32 %v3368_v1  ;;  %v3621_v22 = vadd.f32 %v1529_v54, %v254_v63  ;;  %v1531_v56 = vpop.f32.mrb[7].mxu0  ;;  %v1564_v63 = vadd.s32 8, %v1563_v17  ;;  %v1581_v1 = vadd.s32 8, %v4662_v28 }
 0x1c7   :  { %v1566_v56 = vadd.s32 24, %v1563_v17 }
 0x1c8   :  { %v3737_v53 = vpop.eup %3736  ;;  %v3369_v55 = vmul.f32 -1.442695, %v3621_v22  ;;  %vm1570_vm7 = vcmp.eq.s32.totalorder %v1564_v63, %v4662_v28  ;;  %vm1583_vm8 = vcmp.eq.s32.totalorder %v1564_v63, %v1581_v1 }
 0x1c9   :  { %v1545_v48 = vadd.f32 1.0, %v3737_v53  ;;  %vm1572_vm4 = vcmp.eq.s32.totalorder %v1566_v56, %v4662_v28  ;;  %vm1585_vm5 = vcmp.eq.s32.totalorder %v1566_v56, %v1581_v1  ;;  %vm1602_vm9 = vcmp.eq.s32.totalorder %v1566_v56, %v1598_v7 }
 0x1ca   :  { %3742 = vpow2.f32 %v3369_v55  ;;  %v1565_v55 = vadd.s32 16, %v1563_v17  ;;  %v4700_v51 = vsel %vm1572_vm4, 1.0, %v5624_v60  ;;  %v3376_v39 = vsel %vm1585_vm5, 1.0, %v5624_v60 }
 0x1cb   :  { %3744 = vrcp.f32 %v1545_v48 }
 0x1cc   :  { %v3739_v57 = vpop.eup %3738  ;;  %vm1571_vm3 = vcmp.eq.s32.totalorder %v1565_v55, %v4662_v28  ;;  %vm1584_vm6 = vcmp.eq.s32.totalorder %v1565_v55, %v1581_v1  ;;  %vm1601_vm10 = vcmp.eq.s32.totalorder %v1565_v55, %v1598_v7 }
 0x1cd   :  { %v1546_v52 = vadd.f32 1.0, %v3739_v57  ;;  %v3372_v10 = vsel %vm1571_vm3, 1.0, %v5624_v60  ;;  %v3375_v47 = vsel %vm1584_vm6, 1.0, %v5624_v60  ;;  %v1615_v57 = vadd.s32 24, %v4662_v28 }
 0x1cf   :  { %3746 = vrcp.f32 %v1546_v52  ;;  %v1597_v52 = vadd.f32 %v3376_v39, %v4700_v51  ;;  %vm1619_vm11 = vcmp.eq.s32.totalorder %v1566_v56, %v1615_v57  ;;  %v5627_v56 = vpack.c.bf16 %v4243_v6, %v4219_v35 }
 0x1d0   :  { %v3741_v58 = vpop.eup %3740  ;;  %v3379_v48 = vsel %vm1619_vm11, 1.0, %v5624_v60 }
 0x1d1   :  { %v1547_v61 = vadd.f32 1.0, %v3741_v58  ;;  %v3371_v58 = vsel %vm1570_vm7, 1.0, %v5624_v60 }
 0x1d3   :  { %3748 = vrcp.f32 %v1547_v61  ;;  %v3374_v61 = vsel %vm1583_vm8, 1.0, %v5624_v60 }
 0x1d4   :  { %v3743_v62 = vpop.eup %3742 }
 0x1d5   :  { %v3745_v59 = vpop.eup %3744  ;;  %v1548_v5 = vadd.f32 1.0, %v3743_v62  ;;  %v1596_v62 = vadd.f32 %v3375_v47, %v3372_v10  ;;  %v5630_v47 = vpack.c.bf16 %v3807_v8, %v3794_v4  ;;  %v5632_v4 = vpack.c.bf16 %v3829_v13, %v3819_v11 }
 0x1d6   :  { %1558 = vst.msk [vmem:[%s5456_s3] sm:$0xff] %vm1557_vm1, %v3745_v59  ;;  %v5634_v11 = vpack.c.bf16 %v3857_v20, %v3847_v18  ;;  %v5635_v13 = vpack.c.bf16 %v3872_v24, %v3867_v23  ;;  %v5638_v18 = vpack.c.bf16 %v3909_v33, %v3902_v31  ;;  %v5639_v20 = vpack.c.bf16 %v3927_v37, %v3914_v34  ;;  %v5646_v31 = vld [vmem:[#allocation5_spill] sm:$0xff]  ;;  %v5647_v33 = vld [vmem:[#allocation3_spill] sm:$0xff]  ;;  %v5650_v37 = vld [vmem:[#allocation4_spill] sm:$0xff] }
 0x1d7   :  { %3750 = vrcp.f32 %v1548_v5  ;;  %v3377_v5 = vsel %vm1601_vm10, 1.0, %v5624_v60  ;;  %v5640_v23 = vpack.c.bf16 %v3932_v38, %v3922_v36  ;;  %v5641_v24 = vpack.c.bf16 %v3951_v43, %v3941_v41  ;;  %v5649_v36 = vld [vmem:[#allocation6_spill] sm:$0xff]  ;;  %v5652_v41 = vld [vmem:[#allocation11_spill] sm:$0xff] }
 0x1d8   :  { %v1613_v63 = vadd.f32 %v3377_v5, %v1596_v62  ;;  %v5648_v34 = vpack.c.bf16 %v5646_v31, %v5647_v33  ;;  %v5651_v38 = vpack.c.bf16 %v5649_v36, %v5650_v37  ;;  %v5661_v62 = vld [vmem:[#allocation14_spill] sm:$0xff]  ;;  %v5662_v5 = vld [vmem:[#allocation15_spill] sm:$0xff]  ;;  %v5692_v37 = vld [vmem:[#allocation44_spill] sm:$0xff] }
 0x1d9   :  { %v3747_v54 = vpop.eup %3746  ;;  %v5690_v33 = vld [vmem:[#allocation43_spill] sm:$0xff] }
 0x1da   :  { %1559 = vst.msk [vmem:[%s5456_s3 + $0x8] sm:$0xff] %vm1557_vm1, %v3747_v54  ;;  %v3478_v53 = vpack.c.bf16 %v3747_v54, %v3745_v59  ;;  %v3378_v59 = vsel %vm1602_vm9, 1.0, %v5624_v60  ;;  %v5625_v54 = vpack.c.bf16 %v4166_v0, %v4161_v46  ;;  %v5628_v46 = vpack.c.bf16 %v4248_v21, %v4224_v14 }
 0x1db   :  { %v1614_v55 = vadd.f32 %v3378_v59, %v1597_v52  ;;  %v5629_v0 = vpack.c.bf16 %v3788_v3, %v3783_v2 }
 0x1dc   :  { %3480 = vmatprep.subr.msk.bf16.mxu1 %vm4677_vm2, %v3478_v53 }
 0x1dd   :  { %v3749_v22 = vpop.eup %3748  ;;  %3483 = vmatpush3.bf16.xpose.msk.msra.mxu1 %vm4677_vm2, %v3478_v53  ;;  %v1595_v53 = vadd.f32 %v3374_v61, %v3371_v58  ;;  %v1631_v1 = vadd.f32 %v3379_v48, %v1614_v55  ;;  %v5664_v55 = vld [vmem:[#allocation16_spill] sm:$0xff] }
 0x1de   :  { %1560 = vst.msk [vmem:[%s5456_s3 + $0x10] sm:$0xff] %vm1557_vm1, %v3749_v22 }
 0x1e1   :  { %v3751_v17 = vpop.eup %3750 }
 0x1e2   :  { %1561 = vst.msk [vmem:[%s5456_s3 + $0x18] sm:$0xff] %vm1557_vm1, %v3751_v17  ;;  %v3484_v15 = vpack.c.bf16 %v3751_v17, %v3749_v22  ;;  %v5626_v22 = vpack.c.bf16 %v4199_v26, %v4171_v40  ;;  %v3753_v26 = vmov 0  }
 0x1e3   :  { %v1750_v40 = vsel %vm1749_vm12, 1, %v3753_v26  ;;  %v1764_v6 = vsel %vm1763_vm13, 1, %v3753_v26  ;;  %v1779_v7 = vsel %vm1778_vm14, 1, %v3753_v26 }
 0x1e4   :  { %3486 = vmatprep.subr.msk.bf16.mxu1 %vm4677_vm2, %v3484_v15  ;;  %v1765_v35 = vadd.s32 %v1764_v6, %v1750_v40  ;;  %v5670_v40 = vld [vmem:[#allocation23_spill] sm:$0xff]  ;;  %v5671_v6 = vld [vmem:[#allocation25_spill] sm:$0xff] }
 0x1e5   :  { %3489 = vmatpush3.bf16.xpose.msk.msra.mxu1 %vm4677_vm2, %v3484_v15 }
 0x1e6   :  { %3491 = vmatprep.subr.bf16.mxu1 %v5625_v54  ;;  %v1780_v17 = vadd.s32 %v1779_v7, %v1765_v35  ;;  %v5663_v54 = vld [vmem:[#allocation17_spill] sm:$0xff]  ;;  %v3550_v35 = vpack.c.bf16 %v5671_v6, %v5670_v40  ;;  %v5672_v7 = vld [vmem:[#allocation24_spill] sm:$0xff]  ;;  %v5710_v6 = vld [vmem:[#allocation63_spill] sm:$0xff] }
 0x1e8   :  { %vm3388_vm15 = vcmp.eq.s32.totalorder %v1780_v17, 0  ;;  %vm3389_vm0 = vcmp.eq.s32.totalorder %v1780_v17, 1  ;;  %vm3390_vm2 = vcmp.eq.s32.totalorder %v1780_v17, 2  ;;  %vm3391_vm3 = vcmp.eq.s32.totalorder %v1780_v17, 3  ;;  %v5673_v17 = vld [vmem:[#allocation26_spill] sm:$0xff] }
 0x1ec   :  { %3473 = vmatmul.mubr.msk.f32.vlgmr.msra.gmra.mrb[8].mxu1 %vm1557_vm1, %v1595_v53  ;;  %v3542_v53 = vpack.c.bf16 %v5663_v54, %v5662_v5  ;;  %v5702_v54 = vld [vmem:[#allocation55_spill] sm:$0xff] }
 0x1ed   :  { %3475 = vmatprep.mubr.msk.f32.mxu1 %vm1557_vm1, %v1613_v63  ;;  %3493 = vmatpush1.bf16.msra.mxu1 %v5626_v22  ;;  %v5665_v63 = vld [vmem:[#allocation18_spill] sm:$0xff]  ;;  %v5667_v22 = vld [vmem:[#allocation21_spill] sm:$0xff] }
 0x1ee   :  { %3495 = vmatprep.subr.bf16.mxu1 %v5627_v56  ;;  %v3544_v48 = vpack.c.bf16 %v5665_v63, %v5664_v55  ;;  %v5704_v63 = vld [vmem:[#allocation56_spill] sm:$0xff] }
 0x1f0   :  { %3476 = vmatmul.mubr.msk.f32.gmra.mrb[10].mxu1 %vm1557_vm1, %v1631_v1  ;;  %vm1793_vm1 = vcmask 261120   ;;  %v5666_v1 = vld [vmem:[#allocation19_spill] sm:$0xff] }
 0x1f1   :  { %3497 = vmatpush1.bf16.msra.mxu1 %v5628_v46  ;;  %1870 = vmatprep.mubr.f32.mxu1 %v5624_v60  ;;  %v3546_v56 = vpack.c.bf16 %v5667_v22, %v5666_v1  ;;  %v5668_v46 = vld [vmem:[#allocation20_spill] sm:$0xff]  ;;  %v5706_v22 = vld [vmem:[#allocation59_spill] sm:$0xff] }
 0x1f2   :  { %3499 = vmatprep.subr.bf16.mxu1 %v5629_v0  ;;  %v5669_v0 = vld [vmem:[#allocation22_spill] sm:$0xff] }
 0x1f3   :  { %v3548_v26 = vpack.c.bf16 %v5669_v0, %v5668_v46  ;;  %v5708_v0 = vld [vmem:[#allocation60_spill] sm:$0xff] }
 0x2bf   :  { %v3474_v14 = vpop.f32.mrb[8].mxu1 }
 0x2c0   :  { %v1722_v21 = vpop.f32.mrb[9].mxu1  ;;  %v1786_v3 = vsel %vm3389_vm0, %v3474_v14, 0.0  ;;  %v3552_v14 = vpack.c.bf16 %v5673_v17, %v5672_v7  ;;  %v5712_v17 = vld [vmem:[#allocation64_spill] sm:$0xff] }
 0x2c1   :  { %v1785_v39 = vsel %vm3388_vm15, %v1722_v21, 0.0  ;;  %v4752_v52 = vadd.f32 %v3371_v58, %v1786_v3  ;;  %v5660_v58 = vld [vmem:[#allocation12_spill] sm:$0xff]  ;;  %v5674_v21 = vld [vmem:[#allocation27_spill] sm:$0xff] }
 0x2c2   :  { %v4742_v2 = vadd.f32 %v4667_v32, %v1785_v39  ;;  %v5631_v32 = vpack.c.bf16 %v3824_v12, %v3812_v9  ;;  %v5633_v9 = vpack.c.bf16 %v3852_v19, %v3838_v16  ;;  %v5636_v16 = vpack.c.bf16 %v3884_v27, %v3877_v25  ;;  %v5675_v39 = vld [vmem:[#allocation29_spill] sm:$0xff] }
 0x2c3   :  { %v3477_v15 = vpop.f32.mrb[10].mxu1  ;;  %v5637_v19 = vpack.c.bf16 %v3896_v30, %v3891_v29  ;;  %v5642_v25 = vpack.c.bf16 %v3956_v44, %v3946_v42  ;;  %v5643_v27 = vpack.c.bf16 %v3976_v49, %v3961_v45  ;;  %v5644_v29 = vld [vmem:[#allocation2_spill] sm:$0xff]  ;;  %v5653_v42 = vld [vmem:[#allocation13_spill] sm:$0xff]  ;;  %v5654_v44 = vld [vmem:[#allocation8_spill] sm:$0xff]  ;;  %v3540_v59 = vpack.c.bf16 %v5661_v62, %v5660_v58 }
 0x2c4   :  { %3392 = vmatmul.mubr.msk.f32.vlgmr.msra.gmra.mrb[12].mxu1 %vm1793_vm1, %v4742_v2  ;;  %3452 = vmatmul.mubr.msk.f32.vlgmr.msra.gmra.mrb[8].mxu0 %vm1793_vm1, %v4742_v2  ;;  %v1732_v28 = vpop.f32.mrb[11].mxu1  ;;  %v1788_v8 = vsel %vm3391_vm3, %v3477_v15, 0.0  ;;  %v5645_v30 = vpack.c.bf16 %v3981_v50, %v5644_v29  ;;  %v3538_v43 = vpack.c.bf16 %v5653_v42, %v5652_v41  ;;  %v5655_v45 = vld [vmem:[#allocation7_spill] sm:$0xff]  ;;  %v5657_v50 = vld [vmem:[#allocation10_spill] sm:$0xff]  ;;  %v3554_v3 = vpack.c.bf16 %v5675_v39, %v5674_v21  ;;  %v5676_v15 = vld [vmem:[#allocation28_spill] sm:$0xff] }
 0x2c5   :  { %3501 = vmatpush1.bf16.msra.mxu1 %v5630_v47  ;;  %1876 = vmatprep.mubr.f32.mxu1 %v5624_v60  ;;  %v1787_v57 = vsel %vm3390_vm2, %v1732_v28, 0.0  ;;  %v4779_v12 = vadd.f32 %v4700_v51, %v1788_v8  ;;  %v5656_v49 = vpack.c.bf16 %v5654_v44, %v5655_v45  ;;  %v5677_v28 = vld [vmem:[#allocation30_spill] sm:$0xff]  ;;  %v5680_v8 = vld [vmem:[#allocation32_spill] sm:$0xff]  ;;  %v5694_v42 = vld [vmem:[#allocation47_spill] sm:$0xff] }
 0x2c6   :  { %3211 = vmatprep.mubr.f32.mxu0 %v5624_v60  ;;  %3503 = vmatprep.subr.bf16.mxu1 %v5631_v32  ;;  %v4758_v61 = vadd.f32 %v3372_v10, %v1787_v57  ;;  %v5658_v10 = vld [vmem:[#allocation9_spill] sm:$0xff]  ;;  %v3556_v47 = vpack.c.bf16 %v5677_v28, %v5676_v15  ;;  %v5678_v57 = vld [vmem:[#allocation31_spill] sm:$0xff]  ;;  %v5688_v29 = vld [vmem:[#allocation40_spill] sm:$0xff] }
 0x2c7   :  { %v5659_v51 = vpack.c.bf16 %v5657_v50, %v5658_v10  ;;  %v5679_v32 = vld [vmem:[#allocation33_spill] sm:$0xff]  ;;  %v5696_v45 = vld [vmem:[#allocation48_spill] sm:$0xff]  ;;  %v5698_v10 = vld [vmem:[#allocation51_spill] sm:$0xff] }
 0x2c8   :  { %3393 = vmatmul.mubr.msk.f32.gmra.mrb[14].mxu1 %vm1793_vm1, %v4752_v52  ;;  %3453 = vmatmul.mubr.msk.f32.gmra.mrb[10].mxu0 %vm1793_vm1, %v4752_v52  ;;  %v5700_v62 = vld [vmem:[#allocation52_spill] sm:$0xff]  ;;  %v5714_v39 = vld [vmem:[#allocation67_spill] sm:$0xff] }
 0x2c9   :  { %1882 = vmatprep.mubr.f32.mxu1 %v5624_v60  ;;  %3217 = vmatprep.mubr.f32.mxu0 %v5624_v60  ;;  %v5716_v28 = vld [vmem:[#allocation68_spill] sm:$0xff] }
 0x2ca   :  { %3505 = vmatpush1.bf16.msra.mxu1 %v5632_v4  ;;  %v3558_v4 = vpack.c.bf16 %v5679_v32, %v5678_v57  ;;  %v5718_v32 = vld [vmem:[#allocation71_spill] sm:$0xff] }
 0x2cb   :  { %3507 = vmatprep.subr.bf16.mxu1 %v5633_v9  ;;  %v5681_v9 = vld [vmem:[#allocation34_spill] sm:$0xff] }
 0x2cc   :  { %3394 = vmatmul.mubr.msk.f32.gmra.mrb[16].mxu1 %vm1793_vm1, %v4758_v61  ;;  %3454 = vmatmul.mubr.msk.f32.gmra.mrb[12].mxu0 %vm1793_vm1, %v4758_v61 }
 0x2cd   :  { %1888 = vmatprep.mubr.f32.mxu1 %v5624_v60  ;;  %3223 = vmatprep.mubr.f32.mxu0 %v5624_v60 }
 0x2d0   :  { %3395 = vmatmul.mubr.msk.f32.gmra.mrb[18].mxu1 %vm1793_vm1, %v4779_v12  ;;  %3455 = vmatmul.mubr.msk.f32.gmra.mrb[14].mxu0 %vm1793_vm1, %v4779_v12 }
 0x2d1   :  { %1959 = vmatprep.mubr.f32.mxu1 %v5624_v60 }
 0x2d4   :  { %3396 = vmatmul.mubr.msk.f32.vlgmr.msra.gmra.mrb[20].mxu1 %vm1793_vm1, %v4742_v2 }
 0x2d5   :  { %3509 = vmatpush1.bf16.msra.mxu1 %v5634_v11  ;;  %1965 = vmatprep.mubr.f32.mxu1 %v5624_v60  ;;  %v3560_v11 = vpack.c.bf16 %v5681_v9, %v5680_v8  ;;  %v5720_v9 = vld [vmem:[#allocation72_spill] sm:$0xff] }
 0x2d6   :  { %3511 = vmatprep.subr.bf16.mxu1 %v5635_v13  ;;  %v5682_v13 = vld [vmem:[#allocation35_spill] sm:$0xff] }
 0x2d8   :  { %3397 = vmatmul.mubr.msk.f32.gmra.mrb[22].mxu1 %vm1793_vm1, %v4752_v52 }
 0x2d9   :  { %1971 = vmatprep.mubr.f32.mxu1 %v5624_v60  ;;  %3513 = vmatpush1.bf16.msra.mxu1 %v5636_v16  ;;  %v5683_v16 = vld [vmem:[#allocation37_spill] sm:$0xff] }
 0x2da   :  { %3515 = vmatprep.subr.bf16.mxu1 %v5637_v19  ;;  %v3562_v19 = vpack.c.bf16 %v5683_v16, %v5682_v13  ;;  %v5722_v16 = vld [vmem:[#allocation75_spill] sm:$0xff] }
 0x2dc   :  { %3398 = vmatmul.mubr.msk.f32.gmra.mrb[24].mxu1 %vm1793_vm1, %v4758_v61 }
 0x2dd   :  { %1977 = vmatprep.mubr.f32.mxu1 %v5624_v60 }
 0x2e0   :  { %3399 = vmatmul.mubr.msk.f32.gmra.mrb[26].mxu1 %vm1793_vm1, %v4779_v12 }
 0x2e1   :  { %2048 = vmatprep.mubr.f32.mxu1 %v5624_v60 }
 0x2e4   :  { %3400 = vmatmul.mubr.msk.f32.vlgmr.msra.gmra.mrb[28].mxu1 %vm1793_vm1, %v4742_v2 }
 0x2e5   :  { %3517 = vmatpush1.bf16.msra.mxu1 %v5638_v18  ;;  %2054 = vmatprep.mubr.f32.mxu1 %v5624_v60  ;;  %v5684_v18 = vld [vmem:[#allocation36_spill] sm:$0xff] }
 0x2e6   :  { %3519 = vmatprep.subr.bf16.mxu1 %v5639_v20  ;;  %v5685_v20 = vld [vmem:[#allocation38_spill] sm:$0xff] }
 0x2e8   :  { %3401 = vmatmul.mubr.msk.f32.gmra.mrb[30].mxu1 %vm1793_vm1, %v4752_v52 }
 0x2e9   :  { %2060 = vmatprep.mubr.f32.mxu1 %v5624_v60  ;;  %3521 = vmatpush1.bf16.msra.mxu1 %v5640_v23  ;;  %v3564_v23 = vpack.c.bf16 %v5685_v20, %v5684_v18  ;;  %v5724_v20 = vld [vmem:[#allocation76_spill] sm:$0xff] }
 0x2ea   :  { %3523 = vmatprep.subr.bf16.mxu1 %v5641_v24  ;;  %v5686_v24 = vld [vmem:[#allocation39_spill] sm:$0xff] }
 0x2ec   :  { %3402 = vmatmul.mubr.msk.f32.gmra.mrb[32].mxu1 %vm1793_vm1, %v4758_v61 }
 0x2ed   :  { %2066 = vmatprep.mubr.f32.mxu1 %v5624_v60 }
 0x2f0   :  { %3403 = vmatmul.mubr.msk.f32.gmra.mrb[34].mxu1 %vm1793_vm1, %v4779_v12 }
 0x2f1   :  { %2137 = vmatprep.mubr.f32.mxu1 %v5624_v60 }
 0x2f4   :  { %3404 = vmatmul.mubr.msk.f32.vlgmr.msra.gmra.mrb[36].mxu1 %vm1793_vm1, %v4742_v2 }
 0x2f5   :  { %3525 = vmatpush1.bf16.msra.mxu1 %v5642_v25  ;;  %2143 = vmatprep.mubr.f32.mxu1 %v5624_v60  ;;  %v5687_v25 = vld [vmem:[#allocation41_spill] sm:$0xff] }
 0x2f6   :  { %3527 = vmatprep.subr.bf16.mxu1 %v5643_v27  ;;  %v3566_v27 = vpack.c.bf16 %v5687_v25, %v5686_v24  ;;  %v5726_v25 = vld [vmem:[#allocation79_spill] sm:$0xff] }
 0x2f8   :  { %3405 = vmatmul.mubr.msk.f32.gmra.mrb[38].mxu1 %vm1793_vm1, %v4752_v52 }
 0x2f9   :  { %2149 = vmatprep.mubr.f32.mxu1 %v5624_v60  ;;  %3529 = vmatpush1.bf16.msra.mxu1 %v5645_v30  ;;  %v5689_v30 = vld [vmem:[#allocation42_spill] sm:$0xff] }
 0x2fa   :  { %3531 = vmatprep.subr.bf16.mxu1 %v5648_v34  ;;  %v3568_v31 = vpack.c.bf16 %v5689_v30, %v5688_v29  ;;  %v5691_v34 = vld [vmem:[#allocation45_spill] sm:$0xff]  ;;  %v5728_v30 = vld [vmem:[#allocation80_spill] sm:$0xff] }
 0x2fb   :  { %v3570_v36 = vpack.c.bf16 %v5691_v34, %v5690_v33 }
 0x2fc   :  { %3406 = vmatmul.mubr.msk.f32.gmra.mrb[40].mxu1 %vm1793_vm1, %v4758_v61 }
 0x2fd   :  { %2155 = vmatprep.mubr.f32.mxu1 %v5624_v60 }
 0x300   :  { %3407 = vmatmul.mubr.msk.f32.gmra.mrb[42].mxu1 %vm1793_vm1, %v4779_v12 }
 0x301   :  { %2226 = vmatprep.mubr.f32.mxu1 %v5624_v60 }
 0x304   :  { %3408 = vmatmul.mubr.msk.f32.vlgmr.msra.gmra.mrb[44].mxu1 %vm1793_vm1, %v4742_v2 }
 0x305   :  { %3533 = vmatpush1.bf16.msra.mxu1 %v5651_v38  ;;  %2232 = vmatprep.mubr.f32.mxu1 %v5624_v60  ;;  %v5693_v38 = vld [vmem:[#allocation46_spill] sm:$0xff] }
 0x306   :  { %3535 = vmatprep.subr.bf16.mxu1 %v5656_v49  ;;  %v3572_v41 = vpack.c.bf16 %v5693_v38, %v5692_v37  ;;  %v5697_v49 = vld [vmem:[#allocation50_spill] sm:$0xff] }
 0x307   :  { %v3576_v50 = vpack.c.bf16 %v5697_v49, %v5696_v45 }
 0x308   :  { %3409 = vmatmul.mubr.msk.f32.gmra.mrb[46].mxu1 %vm1793_vm1, %v4752_v52 }
 0x309   :  { %2238 = vmatprep.mubr.f32.mxu1 %v5624_v60  ;;  %3537 = vmatpush1.bf16.msra.mxu1 %v5659_v51  ;;  %v5699_v51 = vld [vmem:[#allocation53_spill] sm:$0xff] }
 0x30a   :  { %3539 = vmatprep.subr.bf16.mxu1 %v3538_v43  ;;  %v5695_v43 = vld [vmem:[#allocation49_spill] sm:$0xff]  ;;  %v3578_v58 = vpack.c.bf16 %v5699_v51, %v5698_v10 }
 0x30b   :  { %v3574_v44 = vpack.c.bf16 %v5695_v43, %v5694_v42 }
 0x30c   :  { %3410 = vmatmul.mubr.msk.f32.gmra.mrb[48].mxu1 %vm1793_vm1, %v4758_v61 }
 0x30d   :  { %2244 = vmatprep.mubr.f32.mxu1 %v5624_v60 }
 0x310   :  { %3411 = vmatmul.mubr.msk.f32.gmra.mrb[50].mxu1 %vm1793_vm1, %v4779_v12 }
 0x311   :  { %2315 = vmatprep.mubr.f32.mxu1 %v5624_v60 }
 0x314   :  { %3412 = vmatmul.mubr.msk.f32.vlgmr.msra.gmra.mrb[52].mxu1 %vm1793_vm1, %v4742_v2 }
 0x315   :  { %3541 = vmatpush1.bf16.msra.mxu1 %v3540_v59  ;;  %2321 = vmatprep.mubr.f32.mxu1 %v5624_v60  ;;  %v5701_v59 = vld [vmem:[#allocation54_spill] sm:$0xff] }
 0x316   :  { %3543 = vmatprep.subr.bf16.mxu1 %v3542_v53  ;;  %v3580_v5 = vpack.c.bf16 %v5701_v59, %v5700_v62  ;;  %v5703_v53 = vld [vmem:[#allocation57_spill] sm:$0xff] }
 0x317   :  { %v3582_v55 = vpack.c.bf16 %v5703_v53, %v5702_v54 }
 0x318   :  { %3413 = vmatmul.mubr.msk.f32.gmra.mrb[54].mxu1 %vm1793_vm1, %v4752_v52 }
 0x319   :  { %2327 = vmatprep.mubr.f32.mxu1 %v5624_v60  ;;  %3545 = vmatpush1.bf16.msra.mxu1 %v3544_v48  ;;  %v5705_v48 = vld [vmem:[#allocation58_spill] sm:$0xff] }
 0x31a   :  { %3547 = vmatprep.subr.bf16.mxu1 %v3546_v56  ;;  %v3584_v1 = vpack.c.bf16 %v5705_v48, %v5704_v63  ;;  %v5707_v56 = vld [vmem:[#allocation61_spill] sm:$0xff] }
 0x31b   :  { %v3586_v46 = vpack.c.bf16 %v5707_v56, %v5706_v22 }
 0x31c   :  { %3414 = vmatmul.mubr.msk.f32.gmra.mrb[56].mxu1 %vm1793_vm1, %v4758_v61 }
 0x31d   :  { %2333 = vmatprep.mubr.f32.mxu1 %v5624_v60 }
 0x320   :  { %3415 = vmatmul.mubr.msk.f32.gmra.mrb[58].mxu1 %vm1793_vm1, %v4779_v12 }
 0x321   :  { %2404 = vmatprep.mubr.f32.mxu1 %v5624_v60 }
 0x324   :  { %3416 = vmatmul.mubr.msk.f32.vlgmr.msra.gmra.mrb[60].mxu1 %vm1793_vm1, %v4742_v2 }
 0x325   :  { %3549 = vmatpush1.bf16.msra.mxu1 %v3548_v26  ;;  %2410 = vmatprep.mubr.f32.mxu1 %v5624_v60  ;;  %v5709_v26 = vld [vmem:[#allocation62_spill] sm:$0xff] }
 0x326   :  { %3551 = vmatprep.subr.bf16.mxu1 %v3550_v35  ;;  %v3588_v40 = vpack.c.bf16 %v5709_v26, %v5708_v0  ;;  %v5711_v35 = vld [vmem:[#allocation65_spill] sm:$0xff] }
 0x327   :  { %v3590_v7 = vpack.c.bf16 %v5711_v35, %v5710_v6 }
 0x328   :  { %3417 = vmatmul.mubr.msk.f32.gmra.mrb[62].mxu1 %vm1793_vm1, %v4752_v52 }
 0x329   :  { %2416 = vmatprep.mubr.f32.mxu1 %v5624_v60  ;;  %3553 = vmatpush1.bf16.msra.mxu1 %v3552_v14  ;;  %v5713_v14 = vld [vmem:[#allocation66_spill] sm:$0xff] }
 0x32a   :  { %3555 = vmatprep.subr.bf16.mxu1 %v3554_v3  ;;  %v3592_v21 = vpack.c.bf16 %v5713_v14, %v5712_v17  ;;  %v5715_v3 = vld [vmem:[#allocation69_spill] sm:$0xff] }
 0x32b   :  { %v3594_v15 = vpack.c.bf16 %v5715_v3, %v5714_v39 }
 0x32c   :  { %3418 = vmatmul.mubr.msk.f32.gmra.mrb[64].mxu1 %vm1793_vm1, %v4758_v61 }
 0x32d   :  { %2422 = vmatprep.mubr.f32.mxu1 %v5624_v60 }
 0x330   :  { %3419 = vmatmul.mubr.msk.f32.gmra.mrb[66].mxu1 %vm1793_vm1, %v4779_v12 }
 0x331   :  { %2493 = vmatprep.mubr.f32.mxu1 %v5624_v60 }
 0x334   :  { %3420 = vmatmul.mubr.msk.f32.vlgmr.msra.gmra.mrb[68].mxu1 %vm1793_vm1, %v4742_v2 }
 0x335   :  { %3557 = vmatpush1.bf16.msra.mxu1 %v3556_v47  ;;  %2499 = vmatprep.mubr.f32.mxu1 %v5624_v60  ;;  %v5717_v47 = vld [vmem:[#allocation70_spill] sm:$0xff] }
 0x336   :  { %3559 = vmatprep.subr.bf16.mxu1 %v3558_v4  ;;  %v3596_v57 = vpack.c.bf16 %v5717_v47, %v5716_v28  ;;  %v5719_v4 = vld [vmem:[#allocation73_spill] sm:$0xff] }
 0x337   :  { %v3598_v8 = vpack.c.bf16 %v5719_v4, %v5718_v32 }
 0x338   :  { %3421 = vmatmul.mubr.msk.f32.gmra.mrb[70].mxu1 %vm1793_vm1, %v4752_v52 }
 0x339   :  { %2505 = vmatprep.mubr.f32.mxu1 %v5624_v60  ;;  %3561 = vmatpush1.bf16.msra.mxu1 %v3560_v11  ;;  %v5721_v11 = vld [vmem:[#allocation74_spill] sm:$0xff] }
 0x33a   :  { %3563 = vmatprep.subr.bf16.mxu1 %v3562_v19  ;;  %v3600_v13 = vpack.c.bf16 %v5721_v11, %v5720_v9  ;;  %v5723_v19 = vld [vmem:[#allocation77_spill] sm:$0xff] }
 0x33b   :  { %v3602_v18 = vpack.c.bf16 %v5723_v19, %v5722_v16 }
 0x33c   :  { %3422 = vmatmul.mubr.msk.f32.gmra.mrb[72].mxu1 %vm1793_vm1, %v4758_v61 }
 0x33d   :  { %2511 = vmatprep.mubr.f32.mxu1 %v5624_v60 }
 0x340   :  { %3423 = vmatmul.mubr.msk.f32.gmra.mrb[74].mxu1 %vm1793_vm1, %v4779_v12 }
 0x341   :  { %2582 = vmatprep.mubr.f32.mxu1 %v5624_v60 }
 0x344   :  { %3424 = vmatmul.mubr.msk.f32.vlgmr.msra.gmra.mrb[76].mxu1 %vm1793_vm1, %v4742_v2 }
 0x345   :  { %3565 = vmatpush1.bf16.msra.mxu1 %v3564_v23  ;;  %2588 = vmatprep.mubr.f32.mxu1 %v5624_v60  ;;  %v5725_v23 = vld [vmem:[#allocation78_spill] sm:$0xff] }
 0x346   :  { %3567 = vmatprep.subr.bf16.mxu1 %v3566_v27  ;;  %v3604_v24 = vpack.c.bf16 %v5725_v23, %v5724_v20  ;;  %v5727_v27 = vld [vmem:[#allocation81_spill] sm:$0xff] }
 0x347   :  { %v3606_v29 = vpack.c.bf16 %v5727_v27, %v5726_v25 }
 0x348   :  { %3425 = vmatmul.mubr.msk.f32.gmra.mrb[78].mxu1 %vm1793_vm1, %v4752_v52 }
 0x349   :  { %2594 = vmatprep.mubr.f32.mxu1 %v5624_v60  ;;  %3569 = vmatpush1.bf16.msra.mxu1 %v3568_v31  ;;  %v5729_v31 = vld [vmem:[#allocation82_spill] sm:$0xff] }
 0x34a   :  { %3571 = vmatprep.subr.bf16.mxu1 %v3570_v36  ;;  %v3608_v33 = vpack.c.bf16 %v5729_v31, %v5728_v30 }
 0x34c   :  { %3426 = vmatmul.mubr.msk.f32.gmra.mrb[80].mxu1 %vm1793_vm1, %v4758_v61 }
 0x34d   :  { %2600 = vmatprep.mubr.f32.mxu1 %v5624_v60 }
 0x350   :  { %3427 = vmatmul.mubr.msk.f32.gmra.mrb[82].mxu1 %vm1793_vm1, %v4779_v12 }
 0x351   :  { %2671 = vmatprep.mubr.f32.mxu1 %v5624_v60 }
 0x354   :  { %3428 = vmatmul.mubr.msk.f32.vlgmr.msra.gmra.mrb[84].mxu1 %vm1793_vm1, %v4742_v2 }
 0x355   :  { %3573 = vmatpush1.bf16.msra.mxu1 %v3572_v41  ;;  %2677 = vmatprep.mubr.f32.mxu1 %v5624_v60 }
 0x356   :  { %3575 = vmatprep.subr.bf16.mxu1 %v3574_v44 }
 0x358   :  { %3429 = vmatmul.mubr.msk.f32.gmra.mrb[86].mxu1 %vm1793_vm1, %v4752_v52 }
 0x359   :  { %2683 = vmatprep.mubr.f32.mxu1 %v5624_v60  ;;  %3577 = vmatpush1.bf16.msra.mxu1 %v3576_v50 }
 0x35a   :  { %3579 = vmatprep.subr.bf16.mxu1 %v3578_v58 }
 0x35c   :  { %3430 = vmatmul.mubr.msk.f32.gmra.mrb[88].mxu1 %vm1793_vm1, %v4758_v61 }
 0x35d   :  { %2689 = vmatprep.mubr.f32.mxu1 %v5624_v60 }
 0x360   :  { %3431 = vmatmul.mubr.msk.f32.gmra.mrb[90].mxu1 %vm1793_vm1, %v4779_v12 }
 0x361   :  { %2760 = vmatprep.mubr.f32.mxu1 %v5624_v60 }
 0x364   :  { %3432 = vmatmul.mubr.msk.f32.vlgmr.msra.gmra.mrb[92].mxu1 %vm1793_vm1, %v4742_v2 }
 0x365   :  { %3581 = vmatpush1.bf16.msra.mxu1 %v3580_v5  ;;  %2766 = vmatprep.mubr.f32.mxu1 %v5624_v60 }
 0x366   :  { %3583 = vmatprep.subr.bf16.mxu1 %v3582_v55 }
 0x368   :  { %3433 = vmatmul.mubr.msk.f32.gmra.mrb[94].mxu1 %vm1793_vm1, %v4752_v52 }
 0x369   :  { %2772 = vmatprep.mubr.f32.mxu1 %v5624_v60  ;;  %3585 = vmatpush1.bf16.msra.mxu1 %v3584_v1 }
 0x36a   :  { %3587 = vmatprep.subr.bf16.mxu1 %v3586_v46 }
 0x36c   :  { %3434 = vmatmul.mubr.msk.f32.gmra.mrb[96].mxu1 %vm1793_vm1, %v4758_v61 }
 0x36d   :  { %2778 = vmatprep.mubr.f32.mxu1 %v5624_v60 }
 0x370   :  { %3435 = vmatmul.mubr.msk.f32.gmra.mrb[98].mxu1 %vm1793_vm1, %v4779_v12 }
 0x371   :  { %2849 = vmatprep.mubr.f32.mxu1 %v5624_v60 }
 0x374   :  { %3436 = vmatmul.mubr.msk.f32.vlgmr.msra.gmra.mrb[100].mxu1 %vm1793_vm1, %v4742_v2 }
 0x375   :  { %3589 = vmatpush1.bf16.msra.mxu1 %v3588_v40  ;;  %2855 = vmatprep.mubr.f32.mxu1 %v5624_v60 }
 0x376   :  { %3591 = vmatprep.subr.bf16.mxu1 %v3590_v7 }
 0x378   :  { %3437 = vmatmul.mubr.msk.f32.gmra.mrb[102].mxu1 %vm1793_vm1, %v4752_v52 }
 0x379   :  { %2861 = vmatprep.mubr.f32.mxu1 %v5624_v60  ;;  %3593 = vmatpush1.bf16.msra.mxu1 %v3592_v21 }
 0x37a   :  { %3595 = vmatprep.subr.bf16.mxu1 %v3594_v15 }
 0x37c   :  { %3438 = vmatmul.mubr.msk.f32.gmra.mrb[104].mxu1 %vm1793_vm1, %v4758_v61 }
 0x37d   :  { %2867 = vmatprep.mubr.f32.mxu1 %v5624_v60 }
 0x380   :  { %3439 = vmatmul.mubr.msk.f32.gmra.mrb[106].mxu1 %vm1793_vm1, %v4779_v12 }
 0x381   :  { %2938 = vmatprep.mubr.f32.mxu1 %v5624_v60 }
 0x384   :  { %3440 = vmatmul.mubr.msk.f32.vlgmr.msra.gmra.mrb[108].mxu1 %vm1793_vm1, %v4742_v2 }
 0x385   :  { %3597 = vmatpush1.bf16.msra.mxu1 %v3596_v57  ;;  %2944 = vmatprep.mubr.f32.mxu1 %v5624_v60 }
 0x386   :  { %3599 = vmatprep.subr.bf16.mxu1 %v3598_v8 }
 0x388   :  { %3441 = vmatmul.mubr.msk.f32.gmra.mrb[110].mxu1 %vm1793_vm1, %v4752_v52 }
 0x389   :  { %2950 = vmatprep.mubr.f32.mxu1 %v5624_v60  ;;  %3601 = vmatpush1.bf16.msra.mxu1 %v3600_v13 }
 0x38a   :  { %3603 = vmatprep.subr.bf16.mxu1 %v3602_v18 }
 0x38c   :  { %3442 = vmatmul.mubr.msk.f32.gmra.mrb[112].mxu1 %vm1793_vm1, %v4758_v61 }
 0x38d   :  { %2956 = vmatprep.mubr.f32.mxu1 %v5624_v60 }
 0x390   :  { %3443 = vmatmul.mubr.msk.f32.gmra.mrb[114].mxu1 %vm1793_vm1, %v4779_v12 }
 0x391   :  { %3027 = vmatprep.mubr.f32.mxu1 %v5624_v60 }
 0x394   :  { %3444 = vmatmul.mubr.msk.f32.vlgmr.msra.gmra.mrb[116].mxu1 %vm1793_vm1, %v4742_v2 }
 0x395   :  { %3605 = vmatpush1.bf16.msra.mxu1 %v3604_v24  ;;  %3033 = vmatprep.mubr.f32.mxu1 %v5624_v60 }
 0x396   :  { %3607 = vmatprep.subr.bf16.mxu1 %v3606_v29 }
 0x397   :  { %v1872_v34 = vpop.f32.mrb[12].mxu1  ;;  %v3207_v36 = vpop.f32.mrb[8].mxu0 }
 0x398   :  { %3230 = vst [vmem:[%s5457_s2] sm:$0xff] %v1872_v34  ;;  %3260 = vst [vmem:[%s5457_s2 + $0xf0] sm:$0xff] %v3207_v36  ;;  %v1874_v37 = vpop.f32.mrb[13].mxu1  ;;  %3445 = vmatmul.mubr.msk.f32.gmra.mrb[118].mxu1 %vm1793_vm1, %v4752_v52  ;;  %v3209_v38 = vpop.f32.mrb[9].mxu0 }
 0x399   :  { %3231 = vst [vmem:[%s5457_s2 + $0x8] sm:$0xff] %v1874_v37  ;;  %3261 = vst [vmem:[%s5457_s2 + $0xf8] sm:$0xff] %v3209_v38  ;;  %3039 = vmatprep.mubr.f32.mxu1 %v5624_v60  ;;  %3609 = vmatpush1.bf16.msra.mxu1 %v3608_v33 }
 0x39b   :  { %v1878_v41 = vpop.f32.mrb[14].mxu1  ;;  %v3213_v42 = vpop.f32.mrb[10].mxu0 }
 0x39c   :  { %3262 = vst [vmem:[%s5457_s2 + $0x100] sm:$0xff] %v1878_v41  ;;  %3292 = vst [vmem:[%s5457_s2 + $0x1f0] sm:$0xff] %v3213_v42  ;;  %v1880_v43 = vpop.f32.mrb[15].mxu1  ;;  %3446 = vmatmul.mubr.msk.f32.gmra.mrb[120].mxu1 %vm1793_vm1, %v4758_v61  ;;  %v3215_v44 = vpop.f32.mrb[11].mxu0 }
 0x39d   :  { %3263 = vst [vmem:[%s5457_s2 + $0x108] sm:$0xff] %v1880_v43  ;;  %3293 = vst [vmem:[%s5457_s2 + $0x1f8] sm:$0xff] %v3215_v44  ;;  %3045 = vmatprep.mubr.f32.mxu1 %v5624_v60 }
 0x39f   :  { %v1884_v45 = vpop.f32.mrb[16].mxu1  ;;  %v3219_v49 = vpop.f32.mrb[12].mxu0 }
 0x3a0   :  { %3294 = vst [vmem:[%s5457_s2 + $0x200] sm:$0xff] %v1884_v45  ;;  %3324 = vst [vmem:[%s5457_s2 + $0x2f0] sm:$0xff] %v3219_v49  ;;  %v1886_v50 = vpop.f32.mrb[17].mxu1  ;;  %3447 = vmatmul.mubr.msk.f32.gmra.mrb[122].mxu1 %vm1793_vm1, %v4779_v12  ;;  %v3221_v10 = vpop.f32.mrb[13].mxu0 }
 0x3a1   :  { %3295 = vst [vmem:[%s5457_s2 + $0x208] sm:$0xff] %v1886_v50  ;;  %3325 = vst [vmem:[%s5457_s2 + $0x2f8] sm:$0xff] %v3221_v10  ;;  %3116 = vmatprep.mubr.f32.mxu1 %v5624_v60 }
 0x3a3   :  { %v1890_v51 = vpop.f32.mrb[18].mxu1  ;;  %v3225_v58 = vpop.f32.mrb[14].mxu0 }
 0x3a4   :  { %3326 = vst [vmem:[%s5457_s2 + $0x300] sm:$0xff] %v1890_v51  ;;  %3356 = vst [vmem:[%s5457_s2 + $0x3f0] sm:$0xff] %v3225_v58  ;;  %v1892_v62 = vpop.f32.mrb[19].mxu1  ;;  %3448 = vmatmul.mubr.msk.f32.vlgmr.msra.gmra.mrb[124].mxu1 %vm1793_vm1, %v4742_v2  ;;  %v3227_v59 = vpop.f32.mrb[15].mxu0 }
 0x3a5   :  { %3327 = vst [vmem:[%s5457_s2 + $0x308] sm:$0xff] %v1892_v62  ;;  %3357 = vst [vmem:[%s5457_s2 + $0x3f8] sm:$0xff] %v3227_v59  ;;  %3122 = vmatprep.mubr.f32.mxu1 %v5624_v60 }
 0x3a7   :  { %v1961_v5 = vpop.f32.mrb[20].mxu1 }
 0x3a8   :  { %3232 = vst [vmem:[%s5457_s2 + $0x10] sm:$0xff] %v1961_v5  ;;  %v1963_v54 = vpop.f32.mrb[21].mxu1  ;;  %3449 = vmatmul.mubr.msk.f32.gmra.mrb[126].mxu1 %vm1793_vm1, %v4752_v52 }
 0x3a9   :  { %3233 = vst [vmem:[%s5457_s2 + $0x18] sm:$0xff] %v1963_v54  ;;  %3128 = vmatprep.mubr.f32.mxu1 %v5624_v60 }
 0x3ab   :  { %v1967_v2 = vpop.f32.mrb[22].mxu1 }
 0x3ac   :  { %3264 = vst [vmem:[%s5457_s2 + $0x110] sm:$0xff] %v1967_v2  ;;  %v1969_v53 = vpop.f32.mrb[23].mxu1  ;;  %3450 = vmatmul.mubr.msk.f32.gmra.mrb[128].mxu1 %vm1793_vm1, %v4758_v61 }
 0x3ad   :  { %3265 = vst [vmem:[%s5457_s2 + $0x118] sm:$0xff] %v1969_v53  ;;  %3134 = vmatprep.mubr.f32.mxu1 %v5624_v60 }
 0x3af   :  { %v1973_v52 = vpop.f32.mrb[24].mxu1 }
 0x3b0   :  { %3296 = vst [vmem:[%s5457_s2 + $0x210] sm:$0xff] %v1973_v52  ;;  %v1975_v55 = vpop.f32.mrb[25].mxu1  ;;  %3451 = vmatmul.mubr.msk.f32.gmra.mrb[130].mxu1 %vm1793_vm1, %v4779_v12 }
 0x3b1   :  { %3297 = vst [vmem:[%s5457_s2 + $0x218] sm:$0xff] %v1975_v55 }
 0x3b3   :  { %v1979_v61 = vpop.f32.mrb[26].mxu1 }
 0x3b4   :  { %3328 = vst [vmem:[%s5457_s2 + $0x310] sm:$0xff] %v1979_v61  ;;  %v1981_v63 = vpop.f32.mrb[27].mxu1 }
 0x3b5   :  { %3329 = vst [vmem:[%s5457_s2 + $0x318] sm:$0xff] %v1981_v63 }
 0x3b7   :  { %v2050_v60 = vpop.f32.mrb[28].mxu1 }
 0x3b8   :  { %3234 = vst [vmem:[%s5457_s2 + $0x20] sm:$0xff] %v2050_v60  ;;  %v2052_v12 = vpop.f32.mrb[29].mxu1 }
 0x3b9   :  { %3235 = vst [vmem:[%s5457_s2 + $0x28] sm:$0xff] %v2052_v12 }
 0x3bb   :  { %v2056_v48 = vpop.f32.mrb[30].mxu1 }
 0x3bc   :  { %3266 = vst [vmem:[%s5457_s2 + $0x120] sm:$0xff] %v2056_v48  ;;  %v2058_v1 = vpop.f32.mrb[31].mxu1 }
 0x3bd   :  { %3267 = vst [vmem:[%s5457_s2 + $0x128] sm:$0xff] %v2058_v1 }
 0x3bf   :  { %v2062_v22 = vpop.f32.mrb[32].mxu1 }
 0x3c0   :  { %3298 = vst [vmem:[%s5457_s2 + $0x220] sm:$0xff] %v2062_v22  ;;  %v2064_v56 = vpop.f32.mrb[33].mxu1 }
 0x3c1   :  { %3299 = vst [vmem:[%s5457_s2 + $0x228] sm:$0xff] %v2064_v56 }
 0x3c3   :  { %v2068_v46 = vpop.f32.mrb[34].mxu1 }
 0x3c4   :  { %3330 = vst [vmem:[%s5457_s2 + $0x320] sm:$0xff] %v2068_v46  ;;  %v2070_v0 = vpop.f32.mrb[35].mxu1 }
 0x3c5   :  { %3331 = vst [vmem:[%s5457_s2 + $0x328] sm:$0xff] %v2070_v0 }
 0x3c7   :  { %v2139_v26 = vpop.f32.mrb[36].mxu1 }
 0x3c8   :  { %3236 = vst [vmem:[%s5457_s2 + $0x30] sm:$0xff] %v2139_v26  ;;  %v2141_v40 = vpop.f32.mrb[37].mxu1 }
 0x3c9   :  { %3237 = vst [vmem:[%s5457_s2 + $0x38] sm:$0xff] %v2141_v40 }
 0x3cb   :  { %v2145_v6 = vpop.f32.mrb[38].mxu1 }
 0x3cc   :  { %3268 = vst [vmem:[%s5457_s2 + $0x130] sm:$0xff] %v2145_v6  ;;  %v2147_v35 = vpop.f32.mrb[39].mxu1 }
 0x3cd   :  { %3269 = vst [vmem:[%s5457_s2 + $0x138] sm:$0xff] %v2147_v35 }
 0x3cf   :  { %v2151_v7 = vpop.f32.mrb[40].mxu1 }
 0x3d0   :  { %3300 = vst [vmem:[%s5457_s2 + $0x230] sm:$0xff] %v2151_v7  ;;  %v2153_v17 = vpop.f32.mrb[41].mxu1 }
 0x3d1   :  { %3301 = vst [vmem:[%s5457_s2 + $0x238] sm:$0xff] %v2153_v17 }
 0x3d3   :  { %v2157_v14 = vpop.f32.mrb[42].mxu1 }
 0x3d4   :  { %3332 = vst [vmem:[%s5457_s2 + $0x330] sm:$0xff] %v2157_v14  ;;  %v2159_v21 = vpop.f32.mrb[43].mxu1 }
 0x3d5   :  { %3333 = vst [vmem:[%s5457_s2 + $0x338] sm:$0xff] %v2159_v21 }
 0x3d7   :  { %v2228_v39 = vpop.f32.mrb[44].mxu1 }
 0x3d8   :  { %3238 = vst [vmem:[%s5457_s2 + $0x40] sm:$0xff] %v2228_v39  ;;  %v2230_v3 = vpop.f32.mrb[45].mxu1 }
 0x3d9   :  { %3239 = vst [vmem:[%s5457_s2 + $0x48] sm:$0xff] %v2230_v3 }
 0x3db   :  { %v2234_v15 = vpop.f32.mrb[46].mxu1 }
 0x3dc   :  { %3270 = vst [vmem:[%s5457_s2 + $0x140] sm:$0xff] %v2234_v15  ;;  %v2236_v28 = vpop.f32.mrb[47].mxu1 }
 0x3dd   :  { %3271 = vst [vmem:[%s5457_s2 + $0x148] sm:$0xff] %v2236_v28 }
 0x3df   :  { %v2240_v47 = vpop.f32.mrb[48].mxu1 }
 0x3e0   :  { %3302 = vst [vmem:[%s5457_s2 + $0x240] sm:$0xff] %v2240_v47  ;;  %v2242_v57 = vpop.f32.mrb[49].mxu1 }
 0x3e1   :  { %3303 = vst [vmem:[%s5457_s2 + $0x248] sm:$0xff] %v2242_v57 }
 0x3e3   :  { %v2246_v32 = vpop.f32.mrb[50].mxu1 }
 0x3e4   :  { %3334 = vst [vmem:[%s5457_s2 + $0x340] sm:$0xff] %v2246_v32  ;;  %v2248_v4 = vpop.f32.mrb[51].mxu1 }
 0x3e5   :  { %3335 = vst [vmem:[%s5457_s2 + $0x348] sm:$0xff] %v2248_v4 }
 0x3e7   :  { %v2317_v8 = vpop.f32.mrb[52].mxu1 }
 0x3e8   :  { %3240 = vst [vmem:[%s5457_s2 + $0x50] sm:$0xff] %v2317_v8  ;;  %v2319_v9 = vpop.f32.mrb[53].mxu1 }
 0x3e9   :  { %3241 = vst [vmem:[%s5457_s2 + $0x58] sm:$0xff] %v2319_v9 }
 0x3eb   :  { %v2323_v11 = vpop.f32.mrb[54].mxu1 }
 0x3ec   :  { %3272 = vst [vmem:[%s5457_s2 + $0x150] sm:$0xff] %v2323_v11  ;;  %v2325_v13 = vpop.f32.mrb[55].mxu1 }
 0x3ed   :  { %3273 = vst [vmem:[%s5457_s2 + $0x158] sm:$0xff] %v2325_v13 }
 0x3ef   :  { %v2329_v16 = vpop.f32.mrb[56].mxu1 }
 0x3f0   :  { %3304 = vst [vmem:[%s5457_s2 + $0x250] sm:$0xff] %v2329_v16  ;;  %v2331_v19 = vpop.f32.mrb[57].mxu1 }
 0x3f1   :  { %3305 = vst [vmem:[%s5457_s2 + $0x258] sm:$0xff] %v2331_v19 }
 0x3f3   :  { %v2335_v18 = vpop.f32.mrb[58].mxu1 }
 0x3f4   :  { %3336 = vst [vmem:[%s5457_s2 + $0x350] sm:$0xff] %v2335_v18  ;;  %v2337_v20 = vpop.f32.mrb[59].mxu1 }
 0x3f5   :  { %3337 = vst [vmem:[%s5457_s2 + $0x358] sm:$0xff] %v2337_v20 }
 0x3f7   :  { %v2406_v23 = vpop.f32.mrb[60].mxu1 }
 0x3f8   :  { %3242 = vst [vmem:[%s5457_s2 + $0x60] sm:$0xff] %v2406_v23  ;;  %v2408_v24 = vpop.f32.mrb[61].mxu1 }
 0x3f9   :  { %3243 = vst [vmem:[%s5457_s2 + $0x68] sm:$0xff] %v2408_v24 }
 0x3fb   :  { %v2412_v25 = vpop.f32.mrb[62].mxu1 }
 0x3fc   :  { %3274 = vst [vmem:[%s5457_s2 + $0x160] sm:$0xff] %v2412_v25  ;;  %v2414_v27 = vpop.f32.mrb[63].mxu1 }
 0x3fd   :  { %3275 = vst [vmem:[%s5457_s2 + $0x168] sm:$0xff] %v2414_v27 }
 0x3ff   :  { %v2418_v29 = vpop.f32.mrb[64].mxu1 }
 0x400   :  { %3306 = vst [vmem:[%s5457_s2 + $0x260] sm:$0xff] %v2418_v29  ;;  %v2420_v30 = vpop.f32.mrb[65].mxu1 }
 0x401   :  { %3307 = vst [vmem:[%s5457_s2 + $0x268] sm:$0xff] %v2420_v30 }
 0x403   :  { %v2424_v31 = vpop.f32.mrb[66].mxu1 }
 0x404   :  { %3338 = vst [vmem:[%s5457_s2 + $0x360] sm:$0xff] %v2424_v31  ;;  %v2426_v33 = vpop.f32.mrb[67].mxu1 }
 0x405   :  { %3339 = vst [vmem:[%s5457_s2 + $0x368] sm:$0xff] %v2426_v33 }
 0x407   :  { %v2495_v34 = vpop.f32.mrb[68].mxu1 }
 0x408   :  { %3244 = vst [vmem:[%s5457_s2 + $0x70] sm:$0xff] %v2495_v34  ;;  %v2497_v36 = vpop.f32.mrb[69].mxu1 }
 0x409   :  { %3245 = vst [vmem:[%s5457_s2 + $0x78] sm:$0xff] %v2497_v36 }
 0x40b   :  { %v2501_v37 = vpop.f32.mrb[70].mxu1 }
 0x40c   :  { %3276 = vst [vmem:[%s5457_s2 + $0x170] sm:$0xff] %v2501_v37  ;;  %v2503_v38 = vpop.f32.mrb[71].mxu1 }
 0x40d   :  { %3277 = vst [vmem:[%s5457_s2 + $0x178] sm:$0xff] %v2503_v38 }
 0x40f   :  { %v2507_v41 = vpop.f32.mrb[72].mxu1 }
 0x410   :  { %3308 = vst [vmem:[%s5457_s2 + $0x270] sm:$0xff] %v2507_v41  ;;  %v2509_v42 = vpop.f32.mrb[73].mxu1 }
 0x411   :  { %3309 = vst [vmem:[%s5457_s2 + $0x278] sm:$0xff] %v2509_v42 }
 0x413   :  { %v2513_v43 = vpop.f32.mrb[74].mxu1 }
 0x414   :  { %3340 = vst [vmem:[%s5457_s2 + $0x370] sm:$0xff] %v2513_v43  ;;  %v2515_v44 = vpop.f32.mrb[75].mxu1 }
 0x415   :  { %3341 = vst [vmem:[%s5457_s2 + $0x378] sm:$0xff] %v2515_v44 }
 0x417   :  { %v2584_v45 = vpop.f32.mrb[76].mxu1 }
 0x418   :  { %3246 = vst [vmem:[%s5457_s2 + $0x80] sm:$0xff] %v2584_v45  ;;  %v2586_v49 = vpop.f32.mrb[77].mxu1 }
 0x419   :  { %3247 = vst [vmem:[%s5457_s2 + $0x88] sm:$0xff] %v2586_v49 }
 0x41b   :  { %v2590_v50 = vpop.f32.mrb[78].mxu1 }
 0x41c   :  { %3278 = vst [vmem:[%s5457_s2 + $0x180] sm:$0xff] %v2590_v50  ;;  %v2592_v10 = vpop.f32.mrb[79].mxu1 }
 0x41d   :  { %3279 = vst [vmem:[%s5457_s2 + $0x188] sm:$0xff] %v2592_v10 }
 0x41f   :  { %v2596_v51 = vpop.f32.mrb[80].mxu1 }
 0x420   :  { %3310 = vst [vmem:[%s5457_s2 + $0x280] sm:$0xff] %v2596_v51  ;;  %v2598_v58 = vpop.f32.mrb[81].mxu1 }
 0x421   :  { %3311 = vst [vmem:[%s5457_s2 + $0x288] sm:$0xff] %v2598_v58 }
 0x423   :  { %v2602_v62 = vpop.f32.mrb[82].mxu1 }
 0x424   :  { %3342 = vst [vmem:[%s5457_s2 + $0x380] sm:$0xff] %v2602_v62  ;;  %v2604_v59 = vpop.f32.mrb[83].mxu1 }
 0x425   :  { %3343 = vst [vmem:[%s5457_s2 + $0x388] sm:$0xff] %v2604_v59 }
 0x427   :  { %v2673_v5 = vpop.f32.mrb[84].mxu1 }
 0x428   :  { %3248 = vst [vmem:[%s5457_s2 + $0x90] sm:$0xff] %v2673_v5  ;;  %v2675_v54 = vpop.f32.mrb[85].mxu1 }
 0x429   :  { %3249 = vst [vmem:[%s5457_s2 + $0x98] sm:$0xff] %v2675_v54 }
 0x42b   :  { %v2679_v2 = vpop.f32.mrb[86].mxu1 }
 0x42c   :  { %3280 = vst [vmem:[%s5457_s2 + $0x190] sm:$0xff] %v2679_v2  ;;  %v2681_v53 = vpop.f32.mrb[87].mxu1 }
 0x42d   :  { %3281 = vst [vmem:[%s5457_s2 + $0x198] sm:$0xff] %v2681_v53 }
 0x42f   :  { %v2685_v52 = vpop.f32.mrb[88].mxu1 }
 0x430   :  { %3312 = vst [vmem:[%s5457_s2 + $0x290] sm:$0xff] %v2685_v52  ;;  %v2687_v55 = vpop.f32.mrb[89].mxu1 }
 0x431   :  { %3313 = vst [vmem:[%s5457_s2 + $0x298] sm:$0xff] %v2687_v55 }
 0x433   :  { %v2691_v61 = vpop.f32.mrb[90].mxu1 }
 0x434   :  { %3344 = vst [vmem:[%s5457_s2 + $0x390] sm:$0xff] %v2691_v61  ;;  %v2693_v63 = vpop.f32.mrb[91].mxu1 }
 0x435   :  { %3345 = vst [vmem:[%s5457_s2 + $0x398] sm:$0xff] %v2693_v63 }
 0x437   :  { %v2762_v60 = vpop.f32.mrb[92].mxu1 }
 0x438   :  { %3250 = vst [vmem:[%s5457_s2 + $0xa0] sm:$0xff] %v2762_v60  ;;  %v2764_v12 = vpop.f32.mrb[93].mxu1 }
 0x439   :  { %3251 = vst [vmem:[%s5457_s2 + $0xa8] sm:$0xff] %v2764_v12 }
 0x43b   :  { %v2768_v48 = vpop.f32.mrb[94].mxu1 }
 0x43c   :  { %3282 = vst [vmem:[%s5457_s2 + $0x1a0] sm:$0xff] %v2768_v48  ;;  %v2770_v1 = vpop.f32.mrb[95].mxu1 }
 0x43d   :  { %3283 = vst [vmem:[%s5457_s2 + $0x1a8] sm:$0xff] %v2770_v1 }
 0x43f   :  { %v2774_v22 = vpop.f32.mrb[96].mxu1 }
 0x440   :  { %3314 = vst [vmem:[%s5457_s2 + $0x2a0] sm:$0xff] %v2774_v22  ;;  %v2776_v56 = vpop.f32.mrb[97].mxu1 }
 0x441   :  { %3315 = vst [vmem:[%s5457_s2 + $0x2a8] sm:$0xff] %v2776_v56 }
 0x443   :  { %v2780_v46 = vpop.f32.mrb[98].mxu1 }
 0x444   :  { %3346 = vst [vmem:[%s5457_s2 + $0x3a0] sm:$0xff] %v2780_v46  ;;  %v2782_v0 = vpop.f32.mrb[99].mxu1 }
 0x445   :  { %3347 = vst [vmem:[%s5457_s2 + $0x3a8] sm:$0xff] %v2782_v0 }
 0x447   :  { %v2851_v26 = vpop.f32.mrb[100].mxu1 }
 0x448   :  { %3252 = vst [vmem:[%s5457_s2 + $0xb0] sm:$0xff] %v2851_v26  ;;  %v2853_v40 = vpop.f32.mrb[101].mxu1 }
 0x449   :  { %3253 = vst [vmem:[%s5457_s2 + $0xb8] sm:$0xff] %v2853_v40 }
 0x44b   :  { %v2857_v6 = vpop.f32.mrb[102].mxu1 }
 0x44c   :  { %3284 = vst [vmem:[%s5457_s2 + $0x1b0] sm:$0xff] %v2857_v6  ;;  %v2859_v35 = vpop.f32.mrb[103].mxu1 }
 0x44d   :  { %3285 = vst [vmem:[%s5457_s2 + $0x1b8] sm:$0xff] %v2859_v35 }
 0x44f   :  { %v2863_v7 = vpop.f32.mrb[104].mxu1 }
 0x450   :  { %3316 = vst [vmem:[%s5457_s2 + $0x2b0] sm:$0xff] %v2863_v7  ;;  %v2865_v17 = vpop.f32.mrb[105].mxu1 }
 0x451   :  { %3317 = vst [vmem:[%s5457_s2 + $0x2b8] sm:$0xff] %v2865_v17 }
 0x453   :  { %v2869_v14 = vpop.f32.mrb[106].mxu1 }
 0x454   :  { %3348 = vst [vmem:[%s5457_s2 + $0x3b0] sm:$0xff] %v2869_v14  ;;  %v2871_v21 = vpop.f32.mrb[107].mxu1 }
 0x455   :  { %3349 = vst [vmem:[%s5457_s2 + $0x3b8] sm:$0xff] %v2871_v21 }
 0x457   :  { %v2940_v39 = vpop.f32.mrb[108].mxu1 }
 0x458   :  { %3254 = vst [vmem:[%s5457_s2 + $0xc0] sm:$0xff] %v2940_v39  ;;  %v2942_v3 = vpop.f32.mrb[109].mxu1 }
 0x459   :  { %3255 = vst [vmem:[%s5457_s2 + $0xc8] sm:$0xff] %v2942_v3 }
 0x45b   :  { %v2946_v15 = vpop.f32.mrb[110].mxu1 }
 0x45c   :  { %3286 = vst [vmem:[%s5457_s2 + $0x1c0] sm:$0xff] %v2946_v15  ;;  %v2948_v28 = vpop.f32.mrb[111].mxu1 }
 0x45d   :  { %3287 = vst [vmem:[%s5457_s2 + $0x1c8] sm:$0xff] %v2948_v28 }
 0x45f   :  { %v2952_v47 = vpop.f32.mrb[112].mxu1 }
 0x460   :  { %3318 = vst [vmem:[%s5457_s2 + $0x2c0] sm:$0xff] %v2952_v47  ;;  %v2954_v57 = vpop.f32.mrb[113].mxu1 }
 0x461   :  { %3319 = vst [vmem:[%s5457_s2 + $0x2c8] sm:$0xff] %v2954_v57 }
 0x463   :  { %v2958_v32 = vpop.f32.mrb[114].mxu1 }
 0x464   :  { %3350 = vst [vmem:[%s5457_s2 + $0x3c0] sm:$0xff] %v2958_v32  ;;  %v2960_v4 = vpop.f32.mrb[115].mxu1 }
 0x465   :  { %3351 = vst [vmem:[%s5457_s2 + $0x3c8] sm:$0xff] %v2960_v4 }
 0x467   :  { %v3029_v8 = vpop.f32.mrb[116].mxu1 }
 0x468   :  { %3256 = vst [vmem:[%s5457_s2 + $0xd0] sm:$0xff] %v3029_v8  ;;  %v3031_v9 = vpop.f32.mrb[117].mxu1 }
 0x469   :  { %3257 = vst [vmem:[%s5457_s2 + $0xd8] sm:$0xff] %v3031_v9 }
 0x46b   :  { %v3035_v11 = vpop.f32.mrb[118].mxu1 }
 0x46c   :  { %3288 = vst [vmem:[%s5457_s2 + $0x1d0] sm:$0xff] %v3035_v11  ;;  %v3037_v13 = vpop.f32.mrb[119].mxu1 }
 0x46d   :  { %3289 = vst [vmem:[%s5457_s2 + $0x1d8] sm:$0xff] %v3037_v13 }
 0x46f   :  { %v3041_v16 = vpop.f32.mrb[120].mxu1 }
 0x470   :  { %3320 = vst [vmem:[%s5457_s2 + $0x2d0] sm:$0xff] %v3041_v16  ;;  %v3043_v19 = vpop.f32.mrb[121].mxu1 }
 0x471   :  { %3321 = vst [vmem:[%s5457_s2 + $0x2d8] sm:$0xff] %v3043_v19 }
 0x473   :  { %v3047_v18 = vpop.f32.mrb[122].mxu1 }
 0x474   :  { %3352 = vst [vmem:[%s5457_s2 + $0x3d0] sm:$0xff] %v3047_v18  ;;  %v3049_v20 = vpop.f32.mrb[123].mxu1 }
 0x475   :  { %3353 = vst [vmem:[%s5457_s2 + $0x3d8] sm:$0xff] %v3049_v20 }
 0x477   :  { %v3118_v23 = vpop.f32.mrb[124].mxu1 }
 0x478   :  { %3258 = vst [vmem:[%s5457_s2 + $0xe0] sm:$0xff] %v3118_v23  ;;  %v3120_v24 = vpop.f32.mrb[125].mxu1 }
 0x479   :  { %3259 = vst [vmem:[%s5457_s2 + $0xe8] sm:$0xff] %v3120_v24 }
 0x47b   :  { %v3124_v25 = vpop.f32.mrb[126].mxu1 }
 0x47c   :  { %3290 = vst [vmem:[%s5457_s2 + $0x1e0] sm:$0xff] %v3124_v25  ;;  %v3126_v27 = vpop.f32.mrb[127].mxu1 }
 0x47d   :  { %3291 = vst [vmem:[%s5457_s2 + $0x1e8] sm:$0xff] %v3126_v27 }
 0x47f   :  { %v3130_v29 = vpop.f32.mrb[128].mxu1 }
 0x480   :  { %3322 = vst [vmem:[%s5457_s2 + $0x2e0] sm:$0xff] %v3130_v29  ;;  %v3132_v30 = vpop.f32.mrb[129].mxu1 }
 0x481   :  { %3323 = vst [vmem:[%s5457_s2 + $0x2e8] sm:$0xff] %v3132_v30 }
 0x483   :  { %v3136_v31 = vpop.f32.mrb[130].mxu1 }
 0x484   :  { %3354 = vst [vmem:[%s5457_s2 + $0x3e0] sm:$0xff] %v3136_v31  ;;  %v3138_v33 = vpop.f32.mrb[131].mxu1 }
 0x485   :  { %3355 = vst [vmem:[%s5457_s2 + $0x3e8] sm:$0xff] %v3138_v33 }

</bundles_post_ra>
